<compile_context>
chip_gen: v5e
topology: v5e:2x2
jax: 0.10.0
libtpu: 0.0.40
codegen_flags: <defaults>
</compile_context>

<pallas_src>
import jax
import jax.numpy as jnp
from jax.experimental import pallas as pl
from jax.experimental.pallas import tpu as pltpu


# ---------------------------------------------------------------------------
# Fused kernel (one grid step == one batch sample)
# ---------------------------------------------------------------------------

def _make_kernel(L1, Lp1, L2, Lout2, U1, U2):
    """Build the fused kernel with static layer geometry closed over."""

    def kernel(x_ref, w1_ref, s1_ref, b1_ref,
               w2_ref, s2_ref, b2_ref,
               w3_ref, s3_ref, b3_ref,
               w4_ref, s4_ref, b4_ref,
               o_ref,
               p1_buf, pad2_ref, pad3_ref, pad4_ref, p2_buf):
        f32 = jnp.float32

        # ---- conv1 (k=50, stride=6, pad=22) + BN + ReLU -------------------
        # Input arrives stride-6 folded as (Lr, 6) bf16; the strided conv is
        # 9 accumulated shifted matmuls (taps 50..53 of w1 are zero-padded).
        acc = jnp.zeros((L1, 64), f32)
        for a in range(9):
            acc = acc + jnp.dot(x_ref[pl.ds(a, L1), :], w1_ref[a],
                                preferred_element_type=f32)
        y1 = jnp.maximum(acc * s1_ref[...] + b1_ref[...], 0.0)  # (L1, 64) f32

        # ---- pool1 (k=8, s=8, pad=2): -inf buffer + 8 strided row-maxes ----
        p1_buf[...] = jnp.full(p1_buf.shape, -jnp.inf, f32)
        p1_buf[pl.ds(2, U1), :] = y1[:U1, :]
        h = p1_buf[pl.ds(0, Lp1, stride=8), :]
        for k in range(1, 8):
            h = jnp.maximum(h, p1_buf[pl.ds(k, Lp1, stride=8), :])
        # dropout(p=0.5): identity in inference mode.
        # TODO(synk): training-mode stochastic dropout mask not implemented.

        # ---- conv2/3/4 ('same', k=8, stride=1) + BN + ReLU -----------------
        def conv_same(pad_ref, h_in, w_ref, s_ref, b_ref):
            cout = w_ref.shape[2]
            pad_ref[...] = jnp.zeros(pad_ref.shape, pad_ref.dtype)
            pad_ref[pl.ds(3, L2), :] = h_in.astype(pad_ref.dtype)  # 'same': 3/4
            a = jnp.zeros((L2, cout), f32)
            for k in range(8):
                a = a + jnp.dot(pad_ref[pl.ds(k, L2), :], w_ref[k],
                                preferred_element_type=f32)
            return jnp.maximum(a * s_ref[...] + b_ref[...], 0.0)

        h = conv_same(pad2_ref, h, w2_ref, s2_ref, b2_ref)   # (L2, 128)
        h = conv_same(pad3_ref, h, w3_ref, s3_ref, b3_ref)
        h = conv_same(pad4_ref, h, w4_ref, s4_ref, b4_ref)

        # ---- pool2 (k=4, s=4, pad=1) ---------------------------------------
        p2_buf[...] = jnp.full(p2_buf.shape, -jnp.inf, f32)
        p2_buf[pl.ds(1, U2), :] = h[:U2, :]
        o = p2_buf[pl.ds(0, Lout2, stride=4), :]
        for k in range(1, 4):
            o = jnp.maximum(o, p2_buf[pl.ds(k, Lout2, stride=4), :])
        o_ref[...] = o                                        # (Lout2, 128) f32

    return kernel


# ---------------------------------------------------------------------------
# Wrapper: layout plumbing + pallas_call
# ---------------------------------------------------------------------------

def small_cnn_forward(x, params):
    """x: (N, 1, 1, W) f32 NCHW with H=1.  Returns (N, 128, 1, Lout2) f32."""
    N, Cin, H, W = x.shape
    assert Cin == 1 and H == 1

    # Static layer geometry (PyTorch conv/pool formulas).
    L1 = (W + 2 * 22 - 50) // 6 + 1           # conv1 output length
    Lp1 = (L1 + 2 * 2 - 8) // 8 + 1           # pool1 output length
    L2 = Lp1                                  # conv2/3/4 ('same') length
    Lout2 = (L2 + 2 * 1 - 4) // 4 + 1         # pool2 output length
    U1 = min(L1, Lp1 * 8 - 2)                 # conv1 rows visible to pool1
    U2 = min(L2, Lout2 * 4 - 1)               # conv4 rows visible to pool2
    Lr = -(-(W + 44) // 6)                    # rows of the stride-6 fold
                                              # (Lr >= L1 + 8 always holds)

    # Stride-6 fold of the input: pad 22 zeros each side, round up to a
    # multiple of 6, reshape to (N, Lr, 6).  Pure layout (no data expansion).
    xl = x.reshape(N, W)
    xp = jnp.pad(xl, ((0, 0), (22, Lr * 6 - W - 22)))
    xr = xp.reshape(N, Lr, 6).astype(jnp.bfloat16)

    kernel = _make_kernel(L1, Lp1, L2, Lout2, U1, U2)

    c3 = lambda n: (0, 0, 0)    # weights: constant block -> VMEM resident
    c2 = lambda n: (0, 0)       # BN scale/bias: constant block

    out = pl.pallas_call(
        kernel,
        grid=(N,),
        in_specs=[
            pl.BlockSpec((None, Lr, 6), lambda n: (n, 0, 0)),   # folded input
            pl.BlockSpec((9, 6, 64), c3),                       # w1
            pl.BlockSpec((1, 64), c2), pl.BlockSpec((1, 64), c2),
            pl.BlockSpec((8, 64, 128), c3),                     # w2
            pl.BlockSpec((1, 128), c2), pl.BlockSpec((1, 128), c2),
            pl.BlockSpec((8, 128, 128), c3),                    # w3
            pl.BlockSpec((1, 128), c2), pl.BlockSpec((1, 128), c2),
            pl.BlockSpec((8, 128, 128), c3),                    # w4
            pl.BlockSpec((1, 128), c2), pl.BlockSpec((1, 128), c2),
        ],
        out_specs=pl.BlockSpec((None, Lout2, 128), lambda n: (n, 0, 0)),
        out_shape=jax.ShapeDtypeStruct((N, Lout2, 128), jnp.float32),
        scratch_shapes=[
            pltpu.VMEM((Lp1 * 8, 64), jnp.float32),     # pool1 -inf buffer
            pltpu.VMEM((L2 + 7, 64), jnp.bfloat16),     # conv2 padded input
            pltpu.VMEM((L2 + 7, 128), jnp.bfloat16),    # conv3 padded input
            pltpu.VMEM((L2 + 7, 128), jnp.bfloat16),    # conv4 padded input
            pltpu.VMEM((Lout2 * 4, 128), jnp.float32),  # pool2 -inf buffer
        ],
        compiler_params=pltpu.CompilerParams(
            dimension_semantics=("parallel",)),
    )(xr, params['w1'], params['s1'], params['b1'],
      params['w2'], params['s2'], params['b2'],
      params['w3'], params['s3'], params['b3'],
      params['w4'], params['s4'], params['b4'])

    # NLC -> NCHW: (N, Lout2, 128) -> (N, 128, 1, Lout2)
    return jnp.transpose(out, (0, 2, 1))[:, :, None, :]


# ---------------------------------------------------------------------------
# Parameter construction (deterministic, synthetic; torch layouts converted)
# ---------------------------------------------------------------------------

def _bn_fold(key, c, eps=1e-5):
    k1, k2, k3, k4 = jax.random.split(key, 4)
    gamma = 1.0 + 0.1 * jax.random.normal(k1, (c,), jnp.float32)
    beta = 0.1 * jax.random.normal(k2, (c,), jnp.float32)
    mean = 0.1 * jax.random.normal(k3, (c,), jnp.float32)
    var = 1.0 + jnp.abs(jax.random.normal(k4, (c,), jnp.float32))
    scale = gamma / jnp.sqrt(var + eps)
    bias = beta - mean * scale
    return scale.reshape(1, c), bias.reshape(1, c)


def make_params(key):
    ks = jax.random.split(key, 8)
    p = {}
    # conv1: torch (64,1,1,50) -> (50,64) -> zero-pad taps to 54 -> (9,6,64)
    wt1 = 0.1 * jax.random.normal(ks[0], (64, 1, 1, 50), jnp.float32)
    w1 = jnp.transpose(wt1[:, 0, 0, :], (1, 0))        # (50, 64): [k, cout]
    w1 = jnp.pad(w1, ((0, 4), (0, 0)))                 # (54, 64), zero taps
    p['w1'] = w1.reshape(9, 6, 64).astype(jnp.bfloat16)
    p['s1'], p['b1'] = _bn_fold(ks[1], 64)

    def same_conv_w(k, cout, cin):
        wt = 0.1 * jax.random.normal(k, (cout, cin, 1, 8), jnp.float32)
        return jnp.transpose(wt[:, :, 0, :], (2, 1, 0)).astype(jnp.bfloat16)

    p['w2'] = same_conv_w(ks[2], 128, 64)
    p['s2'], p['b2'] = _bn_fold(ks[3], 128)
    p['w3'] = same_conv_w(ks[4], 128, 128)
    p['s3'], p['b3'] = _bn_fold(ks[5], 128)
    p['w4'] = same_conv_w(ks[6], 128, 128)
    p['s4'], p['b4'] = _bn_fold(ks[7], 128)
    return p


# ---------------------------------------------------------------------------
# Pure-JAX reference (same bf16-rounded operands, f32 math) for validation
# ---------------------------------------------------------------------------

def _reference_forward(x, params):
    N, _, _, W = x.shape
    h = x.reshape(N, W).astype(jnp.bfloat16).astype(jnp.float32)

    # conv1
    w1 = params['w1'].astype(jnp.float32).reshape(54, 64)[:50]
    hp = jnp.pad(h, ((0, 0), (22, 22)))
    L1 = (W + 44 - 50) // 6 + 1
    idx = jnp.arange(L1)[:, None] * 6 + jnp.arange(50)[None, :]
    y = jnp.einsum('nlk,kc->nlc', hp[:, idx], w1)
    y = jnp.maximum(y * params['s1'] + params['b1'], 0.0)

    def pool(y, k, pad):
        Lo = (y.shape[1] + 2 * pad - k) // k + 1
        yp = jnp.pad(y, ((0, 0), (pad, pad), (0, 0)), constant_values=-jnp.inf)
        idx = jnp.arange(Lo)[:, None] * k + jnp.arange(k)[None, :]
        return jnp.max(yp[:, idx, :], axis=2)

    y = pool(y, 8, 2)

    for name in ('2', '3', '4'):
        w = params['w' + name].astype(jnp.float32)       # (8, Cin, Cout)
        yb = y.astype(jnp.bfloat16).astype(jnp.float32)
        yp = jnp.pad(yb, ((0, 0), (3, 4), (0, 0)))
        L = y.shape[1]
        acc = jnp.zeros((N, L, w.shape[2]), jnp.float32)
        for k in range(8):
            acc = acc + jnp.einsum('nlc,cd->nld', yp[:, k:k + L, :], w[k])
        y = jnp.maximum(acc * params['s' + name] + params['b' + name], 0.0)

    y = pool(y, 4, 1)
    return jnp.transpose(y, (0, 2, 1))[:, :, None, :]


if __name__ == "__main__":
    key = jax.random.PRNGKey(0)
    k_params, k_x = jax.random.split(key)
    params = make_params(k_params)

    # small input: batch=2, 1 channel, H=1, W=300 (one short EEG segment)
    x = jax.random.normal(k_x, (2, 1, 1, 300), jnp.float32)

    out = jax.jit(small_cnn_forward)(x, params)
    out = jax.block_until_ready(out)

    # expected: conv1 -> 50, pool1 -> 6, convs 'same' -> 6, pool2 -> 2
    assert out.shape == (2, 128, 1, 2), out.shape
    assert bool(jnp.all(jnp.isfinite(out)))

    ref = _reference_forward(x, params)
    assert bool(jnp.allclose(out, ref, rtol=1e-2, atol=1e-2)), \
        float(jnp.max(jnp.abs(out - ref)))

    print("KERNEL_OK")
</pallas_src>

<mosaic_0001>
module attributes {stable_mosaic.version = 11 : i64} {
  func.func @kernel(%arg0: i32, %arg1: memref<1x58x6xbf16, #tpu.memory_space<vmem>>, %arg2: memref<9x6x64xbf16, #tpu.memory_space<vmem>>, %arg3: memref<1x64xf32, #tpu.memory_space<vmem>>, %arg4: memref<1x64xf32, #tpu.memory_space<vmem>>, %arg5: memref<8x64x128xbf16, #tpu.memory_space<vmem>>, %arg6: memref<1x128xf32, #tpu.memory_space<vmem>>, %arg7: memref<1x128xf32, #tpu.memory_space<vmem>>, %arg8: memref<8x128x128xbf16, #tpu.memory_space<vmem>>, %arg9: memref<1x128xf32, #tpu.memory_space<vmem>>, %arg10: memref<1x128xf32, #tpu.memory_space<vmem>>, %arg11: memref<8x128x128xbf16, #tpu.memory_space<vmem>>, %arg12: memref<1x128xf32, #tpu.memory_space<vmem>>, %arg13: memref<1x128xf32, #tpu.memory_space<vmem>>, %arg14: memref<1x2x128xf32, #tpu.memory_space<vmem>>, %arg15: memref<48x64xf32, #tpu.memory_space<vmem>>, %arg16: memref<13x64xbf16, #tpu.memory_space<vmem>>, %arg17: memref<13x128xbf16, #tpu.memory_space<vmem>>, %arg18: memref<13x128xbf16, #tpu.memory_space<vmem>>, %arg19: memref<8x128xf32, #tpu.memory_space<vmem>>) attributes {dimension_semantics = [#tpu.dimension_semantics<parallel>], iteration_bounds = array<i64: 2>, scalar_prefetch = 0 : i64, scratch_operands = 5 : i64, tpu.core_type = #tpu.core_type<tc>, window_params = [{transform_indices = @transform_0, window_bounds = array<i64: 1, 58, 6>}, {pipeline_mode = #tpu.pipeline_mode<synchronous>, transform_indices = @transform_1, window_bounds = array<i64: 9, 6, 64>}, {pipeline_mode = #tpu.pipeline_mode<synchronous>, transform_indices = @transform_2, window_bounds = array<i64: 1, 64>}, {pipeline_mode = #tpu.pipeline_mode<synchronous>, transform_indices = @transform_3, window_bounds = array<i64: 1, 64>}, {pipeline_mode = #tpu.pipeline_mode<synchronous>, transform_indices = @transform_4, window_bounds = array<i64: 8, 64, 128>}, {pipeline_mode = #tpu.pipeline_mode<synchronous>, transform_indices = @transform_5, window_bounds = array<i64: 1, 128>}, {pipeline_mode = #tpu.pipeline_mode<synchronous>, transform_indices = @transform_6, window_bounds = array<i64: 1, 128>}, {pipeline_mode = #tpu.pipeline_mode<synchronous>, transform_indices = @transform_7, window_bounds = array<i64: 8, 128, 128>}, {pipeline_mode = #tpu.pipeline_mode<synchronous>, transform_indices = @transform_8, window_bounds = array<i64: 1, 128>}, {pipeline_mode = #tpu.pipeline_mode<synchronous>, transform_indices = @transform_9, window_bounds = array<i64: 1, 128>}, {pipeline_mode = #tpu.pipeline_mode<synchronous>, transform_indices = @transform_10, window_bounds = array<i64: 8, 128, 128>}, {pipeline_mode = #tpu.pipeline_mode<synchronous>, transform_indices = @transform_11, window_bounds = array<i64: 1, 128>}, {pipeline_mode = #tpu.pipeline_mode<synchronous>, transform_indices = @transform_12, window_bounds = array<i64: 1, 128>}, {transform_indices = @transform_13, window_bounds = array<i64: 1, 2, 128>}]} {
    %cst = arith.constant 0.000000e+00 : f32
    %0 = vector.broadcast %cst : f32 to vector<50x64xf32>
    %c0 = arith.constant 0 : index
    %c0_0 = arith.constant 0 : index
    %c0_1 = arith.constant 0 : index
    %1 = vector.load %arg1[%c0, %c0_0, %c0_1] : memref<1x58x6xbf16, #tpu.memory_space<vmem>>, vector<1x50x6xbf16>
    %2 = vector.shape_cast %1 : vector<1x50x6xbf16> to vector<50x6xbf16>
    %c0_2 = arith.constant 0 : index
    %c0_3 = arith.constant 0 : index
    %c0_4 = arith.constant 0 : index
    %3 = vector.load %arg2[%c0_2, %c0_3, %c0_4] : memref<9x6x64xbf16, #tpu.memory_space<vmem>>, vector<1x6x64xbf16>
    %4 = vector.shape_cast %3 : vector<1x6x64xbf16> to vector<6x64xbf16>
    %cst_5 = arith.constant dense<0.000000e+00> : vector<50x64xf32>
    %5 = tpu.matmul %2, %4, %cst_5 {dimension_numbers = #tpu.dot_dimension_numbers<[1], [0], [0], [1], [0, 0, 1, 1], [], []>} : vector<50x6xbf16>, vector<6x64xbf16>, vector<50x64xf32> -> vector<50x64xf32>
    %6 = arith.addf %0, %5 : vector<50x64xf32>
    %c0_6 = arith.constant 0 : index
    %c1 = arith.constant 1 : index
    %c0_7 = arith.constant 0 : index
    %7 = vector.load %arg1[%c0_6, %c1, %c0_7] : memref<1x58x6xbf16, #tpu.memory_space<vmem>>, vector<1x50x6xbf16>
    %8 = vector.shape_cast %7 : vector<1x50x6xbf16> to vector<50x6xbf16>
    %c1_8 = arith.constant 1 : index
    %c0_9 = arith.constant 0 : index
    %c0_10 = arith.constant 0 : index
    %9 = vector.load %arg2[%c1_8, %c0_9, %c0_10] : memref<9x6x64xbf16, #tpu.memory_space<vmem>>, vector<1x6x64xbf16>
    %10 = vector.shape_cast %9 : vector<1x6x64xbf16> to vector<6x64xbf16>
    %cst_11 = arith.constant dense<0.000000e+00> : vector<50x64xf32>
    %11 = tpu.matmul %8, %10, %cst_11 {dimension_numbers = #tpu.dot_dimension_numbers<[1], [0], [0], [1], [0, 0, 1, 1], [], []>} : vector<50x6xbf16>, vector<6x64xbf16>, vector<50x64xf32> -> vector<50x64xf32>
    %12 = arith.addf %6, %11 : vector<50x64xf32>
    %c0_12 = arith.constant 0 : index
    %c2 = arith.constant 2 : index
    %c0_13 = arith.constant 0 : index
    %13 = vector.load %arg1[%c0_12, %c2, %c0_13] : memref<1x58x6xbf16, #tpu.memory_space<vmem>>, vector<1x50x6xbf16>
    %14 = vector.shape_cast %13 : vector<1x50x6xbf16> to vector<50x6xbf16>
    %c2_14 = arith.constant 2 : index
    %c0_15 = arith.constant 0 : index
    %c0_16 = arith.constant 0 : index
    %15 = vector.load %arg2[%c2_14, %c0_15, %c0_16] : memref<9x6x64xbf16, #tpu.memory_space<vmem>>, vector<1x6x64xbf16>
    %16 = vector.shape_cast %15 : vector<1x6x64xbf16> to vector<6x64xbf16>
    %cst_17 = arith.constant dense<0.000000e+00> : vector<50x64xf32>
    %17 = tpu.matmul %14, %16, %cst_17 {dimension_numbers = #tpu.dot_dimension_numbers<[1], [0], [0], [1], [0, 0, 1, 1], [], []>} : vector<50x6xbf16>, vector<6x64xbf16>, vector<50x64xf32> -> vector<50x64xf32>
    %18 = arith.addf %12, %17 : vector<50x64xf32>
    %c0_18 = arith.constant 0 : index
    %c3 = arith.constant 3 : index
    %c0_19 = arith.constant 0 : index
    %19 = vector.load %arg1[%c0_18, %c3, %c0_19] : memref<1x58x6xbf16, #tpu.memory_space<vmem>>, vector<1x50x6xbf16>
    %20 = vector.shape_cast %19 : vector<1x50x6xbf16> to vector<50x6xbf16>
    %c3_20 = arith.constant 3 : index
    %c0_21 = arith.constant 0 : index
    %c0_22 = arith.constant 0 : index
    %21 = vector.load %arg2[%c3_20, %c0_21, %c0_22] : memref<9x6x64xbf16, #tpu.memory_space<vmem>>, vector<1x6x64xbf16>
    %22 = vector.shape_cast %21 : vector<1x6x64xbf16> to vector<6x64xbf16>
    %cst_23 = arith.constant dense<0.000000e+00> : vector<50x64xf32>
    %23 = tpu.matmul %20, %22, %cst_23 {dimension_numbers = #tpu.dot_dimension_numbers<[1], [0], [0], [1], [0, 0, 1, 1], [], []>} : vector<50x6xbf16>, vector<6x64xbf16>, vector<50x64xf32> -> vector<50x64xf32>
    %24 = arith.addf %18, %23 : vector<50x64xf32>
    %c0_24 = arith.constant 0 : index
    %c4 = arith.constant 4 : index
    %c0_25 = arith.constant 0 : index
    %25 = vector.load %arg1[%c0_24, %c4, %c0_25] : memref<1x58x6xbf16, #tpu.memory_space<vmem>>, vector<1x50x6xbf16>
    %26 = vector.shape_cast %25 : vector<1x50x6xbf16> to vector<50x6xbf16>
    %c4_26 = arith.constant 4 : index
    %c0_27 = arith.constant 0 : index
    %c0_28 = arith.constant 0 : index
    %27 = vector.load %arg2[%c4_26, %c0_27, %c0_28] : memref<9x6x64xbf16, #tpu.memory_space<vmem>>, vector<1x6x64xbf16>
    %28 = vector.shape_cast %27 : vector<1x6x64xbf16> to vector<6x64xbf16>
    %cst_29 = arith.constant dense<0.000000e+00> : vector<50x64xf32>
    %29 = tpu.matmul %26, %28, %cst_29 {dimension_numbers = #tpu.dot_dimension_numbers<[1], [0], [0], [1], [0, 0, 1, 1], [], []>} : vector<50x6xbf16>, vector<6x64xbf16>, vector<50x64xf32> -> vector<50x64xf32>
    %30 = arith.addf %24, %29 : vector<50x64xf32>
    %c0_30 = arith.constant 0 : index
    %c5 = arith.constant 5 : index
    %c0_31 = arith.constant 0 : index
    %31 = vector.load %arg1[%c0_30, %c5, %c0_31] : memref<1x58x6xbf16, #tpu.memory_space<vmem>>, vector<1x50x6xbf16>
    %32 = vector.shape_cast %31 : vector<1x50x6xbf16> to vector<50x6xbf16>
    %c5_32 = arith.constant 5 : index
    %c0_33 = arith.constant 0 : index
    %c0_34 = arith.constant 0 : index
    %33 = vector.load %arg2[%c5_32, %c0_33, %c0_34] : memref<9x6x64xbf16, #tpu.memory_space<vmem>>, vector<1x6x64xbf16>
    %34 = vector.shape_cast %33 : vector<1x6x64xbf16> to vector<6x64xbf16>
    %cst_35 = arith.constant dense<0.000000e+00> : vector<50x64xf32>
    %35 = tpu.matmul %32, %34, %cst_35 {dimension_numbers = #tpu.dot_dimension_numbers<[1], [0], [0], [1], [0, 0, 1, 1], [], []>} : vector<50x6xbf16>, vector<6x64xbf16>, vector<50x64xf32> -> vector<50x64xf32>
    %36 = arith.addf %30, %35 : vector<50x64xf32>
    %c0_36 = arith.constant 0 : index
    %c6 = arith.constant 6 : index
    %c0_37 = arith.constant 0 : index
    %37 = vector.load %arg1[%c0_36, %c6, %c0_37] : memref<1x58x6xbf16, #tpu.memory_space<vmem>>, vector<1x50x6xbf16>
    %38 = vector.shape_cast %37 : vector<1x50x6xbf16> to vector<50x6xbf16>
    %c6_38 = arith.constant 6 : index
    %c0_39 = arith.constant 0 : index
    %c0_40 = arith.constant 0 : index
    %39 = vector.load %arg2[%c6_38, %c0_39, %c0_40] : memref<9x6x64xbf16, #tpu.memory_space<vmem>>, vector<1x6x64xbf16>
    %40 = vector.shape_cast %39 : vector<1x6x64xbf16> to vector<6x64xbf16>
    %cst_41 = arith.constant dense<0.000000e+00> : vector<50x64xf32>
    %41 = tpu.matmul %38, %40, %cst_41 {dimension_numbers = #tpu.dot_dimension_numbers<[1], [0], [0], [1], [0, 0, 1, 1], [], []>} : vector<50x6xbf16>, vector<6x64xbf16>, vector<50x64xf32> -> vector<50x64xf32>
    %42 = arith.addf %36, %41 : vector<50x64xf32>
    %c0_42 = arith.constant 0 : index
    %c7 = arith.constant 7 : index
    %c0_43 = arith.constant 0 : index
    %43 = vector.load %arg1[%c0_42, %c7, %c0_43] : memref<1x58x6xbf16, #tpu.memory_space<vmem>>, vector<1x50x6xbf16>
    %44 = vector.shape_cast %43 : vector<1x50x6xbf16> to vector<50x6xbf16>
    %c7_44 = arith.constant 7 : index
    %c0_45 = arith.constant 0 : index
    %c0_46 = arith.constant 0 : index
    %45 = vector.load %arg2[%c7_44, %c0_45, %c0_46] : memref<9x6x64xbf16, #tpu.memory_space<vmem>>, vector<1x6x64xbf16>
    %46 = vector.shape_cast %45 : vector<1x6x64xbf16> to vector<6x64xbf16>
    %cst_47 = arith.constant dense<0.000000e+00> : vector<50x64xf32>
    %47 = tpu.matmul %44, %46, %cst_47 {dimension_numbers = #tpu.dot_dimension_numbers<[1], [0], [0], [1], [0, 0, 1, 1], [], []>} : vector<50x6xbf16>, vector<6x64xbf16>, vector<50x64xf32> -> vector<50x64xf32>
    %48 = arith.addf %42, %47 : vector<50x64xf32>
    %c0_48 = arith.constant 0 : index
    %c8 = arith.constant 8 : index
    %c0_49 = arith.constant 0 : index
    %49 = vector.load %arg1[%c0_48, %c8, %c0_49] : memref<1x58x6xbf16, #tpu.memory_space<vmem>>, vector<1x50x6xbf16>
    %50 = vector.shape_cast %49 : vector<1x50x6xbf16> to vector<50x6xbf16>
    %c8_50 = arith.constant 8 : index
    %c0_51 = arith.constant 0 : index
    %c0_52 = arith.constant 0 : index
    %51 = vector.load %arg2[%c8_50, %c0_51, %c0_52] : memref<9x6x64xbf16, #tpu.memory_space<vmem>>, vector<1x6x64xbf16>
    %52 = vector.shape_cast %51 : vector<1x6x64xbf16> to vector<6x64xbf16>
    %cst_53 = arith.constant dense<0.000000e+00> : vector<50x64xf32>
    %53 = tpu.matmul %50, %52, %cst_53 {dimension_numbers = #tpu.dot_dimension_numbers<[1], [0], [0], [1], [0, 0, 1, 1], [], []>} : vector<50x6xbf16>, vector<6x64xbf16>, vector<50x64xf32> -> vector<50x64xf32>
    %54 = arith.addf %48, %53 : vector<50x64xf32>
    %c0_54 = arith.constant 0 : index
    %c0_55 = arith.constant 0 : index
    %55 = vector.load %arg3[%c0_54, %c0_55] : memref<1x64xf32, #tpu.memory_space<vmem>>, vector<1x64xf32>
    %56 = vector.broadcast %55 : vector<1x64xf32> to vector<50x64xf32>
    %57 = arith.mulf %54, %56 : vector<50x64xf32>
    %c0_56 = arith.constant 0 : index
    %c0_57 = arith.constant 0 : index
    %58 = vector.load %arg4[%c0_56, %c0_57] : memref<1x64xf32, #tpu.memory_space<vmem>>, vector<1x64xf32>
    %59 = vector.broadcast %58 : vector<1x64xf32> to vector<50x64xf32>
    %60 = arith.addf %57, %59 : vector<50x64xf32>
    %cst_58 = arith.constant 0.000000e+00 : f32
    %61 = vector.broadcast %cst_58 : f32 to vector<50x64xf32>
    %62 = arith.maximumf %60, %61 : vector<50x64xf32>
    %cst_59 = arith.constant 0xFF800000 : f32
    %63 = vector.broadcast %cst_59 : f32 to vector<48x64xf32>
    %c0_60 = arith.constant 0 : index
    %c0_61 = arith.constant 0 : index
    %64 = vector.load %arg15[%c0_60, %c0_61] : memref<48x64xf32, #tpu.memory_space<vmem>>, vector<48x64xf32>
    tpu.vector_store %arg15[%c0_60, %c0_61], %63 {strides = array<i32>} : memref<48x64xf32, #tpu.memory_space<vmem>>, vector<48x64xf32>,
    %65 = vector.extract_strided_slice %62 {offsets = [0, 0], sizes = [46, 64], strides = [1, 1]} : vector<50x64xf32> to vector<46x64xf32>
    %c2_62 = arith.constant 2 : index
    %c0_63 = arith.constant 0 : index
    %66 = vector.load %arg15[%c2_62, %c0_63] : memref<48x64xf32, #tpu.memory_space<vmem>>, vector<46x64xf32>
    tpu.vector_store %arg15[%c2_62, %c0_63], %65 {strides = array<i32>} : memref<48x64xf32, #tpu.memory_space<vmem>>, vector<46x64xf32>,
    %c0_64 = arith.constant 0 : index
    %c0_65 = arith.constant 0 : index
    %67 = tpu.strided_load %arg15[%c0_64, %c0_65] {strides = array<i32: 8, 1>} : memref<48x64xf32, #tpu.memory_space<vmem>>, vector<6x64xf32>
    %c1_66 = arith.constant 1 : index
    %c0_67 = arith.constant 0 : index
    %68 = tpu.strided_load %arg15[%c1_66, %c0_67] {strides = array<i32: 8, 1>} : memref<48x64xf32, #tpu.memory_space<vmem>>, vector<6x64xf32>
    %69 = arith.maximumf %67, %68 : vector<6x64xf32>
    %c2_68 = arith.constant 2 : index
    %c0_69 = arith.constant 0 : index
    %70 = tpu.strided_load %arg15[%c2_68, %c0_69] {strides = array<i32: 8, 1>} : memref<48x64xf32, #tpu.memory_space<vmem>>, vector<6x64xf32>
    %71 = arith.maximumf %69, %70 : vector<6x64xf32>
    %c3_70 = arith.constant 3 : index
    %c0_71 = arith.constant 0 : index
    %72 = tpu.strided_load %arg15[%c3_70, %c0_71] {strides = array<i32: 8, 1>} : memref<48x64xf32, #tpu.memory_space<vmem>>, vector<6x64xf32>
    %73 = arith.maximumf %71, %72 : vector<6x64xf32>
    %c4_72 = arith.constant 4 : index
    %c0_73 = arith.constant 0 : index
    %74 = tpu.strided_load %arg15[%c4_72, %c0_73] {strides = array<i32: 8, 1>} : memref<48x64xf32, #tpu.memory_space<vmem>>, vector<6x64xf32>
    %75 = arith.maximumf %73, %74 : vector<6x64xf32>
    %c5_74 = arith.constant 5 : index
    %c0_75 = arith.constant 0 : index
    %76 = tpu.strided_load %arg15[%c5_74, %c0_75] {strides = array<i32: 8, 1>} : memref<48x64xf32, #tpu.memory_space<vmem>>, vector<6x64xf32>
    %77 = arith.maximumf %75, %76 : vector<6x64xf32>
    %c6_76 = arith.constant 6 : index
    %c0_77 = arith.constant 0 : index
    %78 = tpu.strided_load %arg15[%c6_76, %c0_77] {strides = array<i32: 8, 1>} : memref<48x64xf32, #tpu.memory_space<vmem>>, vector<6x64xf32>
    %79 = arith.maximumf %77, %78 : vector<6x64xf32>
    %c7_78 = arith.constant 7 : index
    %c0_79 = arith.constant 0 : index
    %80 = tpu.strided_load %arg15[%c7_78, %c0_79] {strides = array<i32: 8, 1>} : memref<48x64xf32, #tpu.memory_space<vmem>>, vector<6x64xf32>
    %81 = arith.maximumf %79, %80 : vector<6x64xf32>
    %cst_80 = arith.constant 0.000000e+00 : bf16
    %82 = vector.broadcast %cst_80 : bf16 to vector<13x64xbf16>
    %c0_81 = arith.constant 0 : index
    %c0_82 = arith.constant 0 : index
    %83 = vector.load %arg16[%c0_81, %c0_82] : memref<13x64xbf16, #tpu.memory_space<vmem>>, vector<13x64xbf16>
    tpu.vector_store %arg16[%c0_81, %c0_82], %82 {strides = array<i32>} : memref<13x64xbf16, #tpu.memory_space<vmem>>, vector<13x64xbf16>,
    %84 = arith.truncf %81 : vector<6x64xf32> to vector<6x64xbf16>
    %c3_83 = arith.constant 3 : index
    %c0_84 = arith.constant 0 : index
    %85 = vector.load %arg16[%c3_83, %c0_84] : memref<13x64xbf16, #tpu.memory_space<vmem>>, vector<6x64xbf16>
    tpu.vector_store %arg16[%c3_83, %c0_84], %84 {strides = array<i32>} : memref<13x64xbf16, #tpu.memory_space<vmem>>, vector<6x64xbf16>,
    %cst_85 = arith.constant 0.000000e+00 : f32
    %86 = vector.broadcast %cst_85 : f32 to vector<6x128xf32>
    %c0_86 = arith.constant 0 : index
    %c0_87 = arith.constant 0 : index
    %87 = vector.load %arg16[%c0_86, %c0_87] : memref<13x64xbf16, #tpu.memory_space<vmem>>, vector<6x64xbf16>
    %c0_88 = arith.constant 0 : index
    %c0_89 = arith.constant 0 : index
    %c0_90 = arith.constant 0 : index
    %88 = vector.load %arg5[%c0_88, %c0_89, %c0_90] : memref<8x64x128xbf16, #tpu.memory_space<vmem>>, vector<1x64x128xbf16>
    %89 = vector.shape_cast %88 : vector<1x64x128xbf16> to vector<64x128xbf16>
    %cst_91 = arith.constant dense<0.000000e+00> : vector<6x128xf32>
    %90 = tpu.matmul %87, %89, %cst_91 {dimension_numbers = #tpu.dot_dimension_numbers<[1], [0], [0], [1], [0, 0, 1, 1], [], []>} : vector<6x64xbf16>, vector<64x128xbf16>, vector<6x128xf32> -> vector<6x128xf32>
    %91 = arith.addf %86, %90 : vector<6x128xf32>
    %c1_92 = arith.constant 1 : index
    %c0_93 = arith.constant 0 : index
    %92 = vector.load %arg16[%c1_92, %c0_93] : memref<13x64xbf16, #tpu.memory_space<vmem>>, vector<6x64xbf16>
    %c1_94 = arith.constant 1 : index
    %c0_95 = arith.constant 0 : index
    %c0_96 = arith.constant 0 : index
    %93 = vector.load %arg5[%c1_94, %c0_95, %c0_96] : memref<8x64x128xbf16, #tpu.memory_space<vmem>>, vector<1x64x128xbf16>
    %94 = vector.shape_cast %93 : vector<1x64x128xbf16> to vector<64x128xbf16>
    %cst_97 = arith.constant dense<0.000000e+00> : vector<6x128xf32>
    %95 = tpu.matmul %92, %94, %cst_97 {dimension_numbers = #tpu.dot_dimension_numbers<[1], [0], [0], [1], [0, 0, 1, 1], [], []>} : vector<6x64xbf16>, vector<64x128xbf16>, vector<6x128xf32> -> vector<6x128xf32>
    %96 = arith.addf %91, %95 : vector<6x128xf32>
    %c2_98 = arith.constant 2 : index
    %c0_99 = arith.constant 0 : index
    %97 = vector.load %arg16[%c2_98, %c0_99] : memref<13x64xbf16, #tpu.memory_space<vmem>>, vector<6x64xbf16>
    %c2_100 = arith.constant 2 : index
    %c0_101 = arith.constant 0 : index
    %c0_102 = arith.constant 0 : index
    %98 = vector.load %arg5[%c2_100, %c0_101, %c0_102] : memref<8x64x128xbf16, #tpu.memory_space<vmem>>, vector<1x64x128xbf16>
    %99 = vector.shape_cast %98 : vector<1x64x128xbf16> to vector<64x128xbf16>
    %cst_103 = arith.constant dense<0.000000e+00> : vector<6x128xf32>
    %100 = tpu.matmul %97, %99, %cst_103 {dimension_numbers = #tpu.dot_dimension_numbers<[1], [0], [0], [1], [0, 0, 1, 1], [], []>} : vector<6x64xbf16>, vector<64x128xbf16>, vector<6x128xf32> -> vector<6x128xf32>
    %101 = arith.addf %96, %100 : vector<6x128xf32>
    %c3_104 = arith.constant 3 : index
    %c0_105 = arith.constant 0 : index
    %102 = vector.load %arg16[%c3_104, %c0_105] : memref<13x64xbf16, #tpu.memory_space<vmem>>, vector<6x64xbf16>
    %c3_106 = arith.constant 3 : index
    %c0_107 = arith.constant 0 : index
    %c0_108 = arith.constant 0 : index
    %103 = vector.load %arg5[%c3_106, %c0_107, %c0_108] : memref<8x64x128xbf16, #tpu.memory_space<vmem>>, vector<1x64x128xbf16>
    %104 = vector.shape_cast %103 : vector<1x64x128xbf16> to vector<64x128xbf16>
    %cst_109 = arith.constant dense<0.000000e+00> : vector<6x128xf32>
    %105 = tpu.matmul %102, %104, %cst_109 {dimension_numbers = #tpu.dot_dimension_numbers<[1], [0], [0], [1], [0, 0, 1, 1], [], []>} : vector<6x64xbf16>, vector<64x128xbf16>, vector<6x128xf32> -> vector<6x128xf32>
    %106 = arith.addf %101, %105 : vector<6x128xf32>
    %c4_110 = arith.constant 4 : index
    %c0_111 = arith.constant 0 : index
    %107 = vector.load %arg16[%c4_110, %c0_111] : memref<13x64xbf16, #tpu.memory_space<vmem>>, vector<6x64xbf16>
    %c4_112 = arith.constant 4 : index
    %c0_113 = arith.constant 0 : index
    %c0_114 = arith.constant 0 : index
    %108 = vector.load %arg5[%c4_112, %c0_113, %c0_114] : memref<8x64x128xbf16, #tpu.memory_space<vmem>>, vector<1x64x128xbf16>
    %109 = vector.shape_cast %108 : vector<1x64x128xbf16> to vector<64x128xbf16>
    %cst_115 = arith.constant dense<0.000000e+00> : vector<6x128xf32>
    %110 = tpu.matmul %107, %109, %cst_115 {dimension_numbers = #tpu.dot_dimension_numbers<[1], [0], [0], [1], [0, 0, 1, 1], [], []>} : vector<6x64xbf16>, vector<64x128xbf16>, vector<6x128xf32> -> vector<6x128xf32>
    %111 = arith.addf %106, %110 : vector<6x128xf32>
    %c5_116 = arith.constant 5 : index
    %c0_117 = arith.constant 0 : index
    %112 = vector.load %arg16[%c5_116, %c0_117] : memref<13x64xbf16, #tpu.memory_space<vmem>>, vector<6x64xbf16>
    %c5_118 = arith.constant 5 : index
    %c0_119 = arith.constant 0 : index
    %c0_120 = arith.constant 0 : index
    %113 = vector.load %arg5[%c5_118, %c0_119, %c0_120] : memref<8x64x128xbf16, #tpu.memory_space<vmem>>, vector<1x64x128xbf16>
    %114 = vector.shape_cast %113 : vector<1x64x128xbf16> to vector<64x128xbf16>
    %cst_121 = arith.constant dense<0.000000e+00> : vector<6x128xf32>
    %115 = tpu.matmul %112, %114, %cst_121 {dimension_numbers = #tpu.dot_dimension_numbers<[1], [0], [0], [1], [0, 0, 1, 1], [], []>} : vector<6x64xbf16>, vector<64x128xbf16>, vector<6x128xf32> -> vector<6x128xf32>
    %116 = arith.addf %111, %115 : vector<6x128xf32>
    %c6_122 = arith.constant 6 : index
    %c0_123 = arith.constant 0 : index
    %117 = vector.load %arg16[%c6_122, %c0_123] : memref<13x64xbf16, #tpu.memory_space<vmem>>, vector<6x64xbf16>
    %c6_124 = arith.constant 6 : index
    %c0_125 = arith.constant 0 : index
    %c0_126 = arith.constant 0 : index
    %118 = vector.load %arg5[%c6_124, %c0_125, %c0_126] : memref<8x64x128xbf16, #tpu.memory_space<vmem>>, vector<1x64x128xbf16>
    %119 = vector.shape_cast %118 : vector<1x64x128xbf16> to vector<64x128xbf16>
    %cst_127 = arith.constant dense<0.000000e+00> : vector<6x128xf32>
    %120 = tpu.matmul %117, %119, %cst_127 {dimension_numbers = #tpu.dot_dimension_numbers<[1], [0], [0], [1], [0, 0, 1, 1], [], []>} : vector<6x64xbf16>, vector<64x128xbf16>, vector<6x128xf32> -> vector<6x128xf32>
    %121 = arith.addf %116, %120 : vector<6x128xf32>
    %c7_128 = arith.constant 7 : index
    %c0_129 = arith.constant 0 : index
    %122 = vector.load %arg16[%c7_128, %c0_129] : memref<13x64xbf16, #tpu.memory_space<vmem>>, vector<6x64xbf16>
    %c7_130 = arith.constant 7 : index
    %c0_131 = arith.constant 0 : index
    %c0_132 = arith.constant 0 : index
    %123 = vector.load %arg5[%c7_130, %c0_131, %c0_132] : memref<8x64x128xbf16, #tpu.memory_space<vmem>>, vector<1x64x128xbf16>
    %124 = vector.shape_cast %123 : vector<1x64x128xbf16> to vector<64x128xbf16>
    %cst_133 = arith.constant dense<0.000000e+00> : vector<6x128xf32>
    %125 = tpu.matmul %122, %124, %cst_133 {dimension_numbers = #tpu.dot_dimension_numbers<[1], [0], [0], [1], [0, 0, 1, 1], [], []>} : vector<6x64xbf16>, vector<64x128xbf16>, vector<6x128xf32> -> vector<6x128xf32>
    %126 = arith.addf %121, %125 : vector<6x128xf32>
    %c0_134 = arith.constant 0 : index
    %c0_135 = arith.constant 0 : index
    %127 = vector.load %arg6[%c0_134, %c0_135] : memref<1x128xf32, #tpu.memory_space<vmem>>, vector<1x128xf32>
    %128 = vector.broadcast %127 : vector<1x128xf32> to vector<6x128xf32>
    %129 = arith.mulf %126, %128 : vector<6x128xf32>
    %c0_136 = arith.constant 0 : index
    %c0_137 = arith.constant 0 : index
    %130 = vector.load %arg7[%c0_136, %c0_137] : memref<1x128xf32, #tpu.memory_space<vmem>>, vector<1x128xf32>
    %131 = vector.broadcast %130 : vector<1x128xf32> to vector<6x128xf32>
    %132 = arith.addf %129, %131 : vector<6x128xf32>
    %cst_138 = arith.constant 0.000000e+00 : f32
    %133 = vector.broadcast %cst_138 : f32 to vector<6x128xf32>
    %134 = arith.maximumf %132, %133 : vector<6x128xf32>
    %cst_139 = arith.constant 0.000000e+00 : bf16
    %135 = vector.broadcast %cst_139 : bf16 to vector<13x128xbf16>
    %c0_140 = arith.constant 0 : index
    %c0_141 = arith.constant 0 : index
    %136 = vector.load %arg17[%c0_140, %c0_141] : memref<13x128xbf16, #tpu.memory_space<vmem>>, vector<13x128xbf16>
    tpu.vector_store %arg17[%c0_140, %c0_141], %135 {strides = array<i32>} : memref<13x128xbf16, #tpu.memory_space<vmem>>, vector<13x128xbf16>,
    %137 = arith.truncf %134 : vector<6x128xf32> to vector<6x128xbf16>
    %c3_142 = arith.constant 3 : index
    %c0_143 = arith.constant 0 : index
    %138 = vector.load %arg17[%c3_142, %c0_143] : memref<13x128xbf16, #tpu.memory_space<vmem>>, vector<6x128xbf16>
    tpu.vector_store %arg17[%c3_142, %c0_143], %137 {strides = array<i32>} : memref<13x128xbf16, #tpu.memory_space<vmem>>, vector<6x128xbf16>,
    %cst_144 = arith.constant 0.000000e+00 : f32
    %139 = vector.broadcast %cst_144 : f32 to vector<6x128xf32>
    %c0_145 = arith.constant 0 : index
    %c0_146 = arith.constant 0 : index
    %140 = vector.load %arg17[%c0_145, %c0_146] : memref<13x128xbf16, #tpu.memory_space<vmem>>, vector<6x128xbf16>
    %c0_147 = arith.constant 0 : index
    %c0_148 = arith.constant 0 : index
    %c0_149 = arith.constant 0 : index
    %141 = vector.load %arg8[%c0_147, %c0_148, %c0_149] : memref<8x128x128xbf16, #tpu.memory_space<vmem>>, vector<1x128x128xbf16>
    %142 = vector.shape_cast %141 : vector<1x128x128xbf16> to vector<128x128xbf16>
    %cst_150 = arith.constant dense<0.000000e+00> : vector<6x128xf32>
    %143 = tpu.matmul %140, %142, %cst_150 {dimension_numbers = #tpu.dot_dimension_numbers<[1], [0], [0], [1], [0, 0, 1, 1], [], []>} : vector<6x128xbf16>, vector<128x128xbf16>, vector<6x128xf32> -> vector<6x128xf32>
    %144 = arith.addf %139, %143 : vector<6x128xf32>
    %c1_151 = arith.constant 1 : index
    %c0_152 = arith.constant 0 : index
    %145 = vector.load %arg17[%c1_151, %c0_152] : memref<13x128xbf16, #tpu.memory_space<vmem>>, vector<6x128xbf16>
    %c1_153 = arith.constant 1 : index
    %c0_154 = arith.constant 0 : index
    %c0_155 = arith.constant 0 : index
    %146 = vector.load %arg8[%c1_153, %c0_154, %c0_155] : memref<8x128x128xbf16, #tpu.memory_space<vmem>>, vector<1x128x128xbf16>
    %147 = vector.shape_cast %146 : vector<1x128x128xbf16> to vector<128x128xbf16>
    %cst_156 = arith.constant dense<0.000000e+00> : vector<6x128xf32>
    %148 = tpu.matmul %145, %147, %cst_156 {dimension_numbers = #tpu.dot_dimension_numbers<[1], [0], [0], [1], [0, 0, 1, 1], [], []>} : vector<6x128xbf16>, vector<128x128xbf16>, vector<6x128xf32> -> vector<6x128xf32>
    %149 = arith.addf %144, %148 : vector<6x128xf32>
    %c2_157 = arith.constant 2 : index
    %c0_158 = arith.constant 0 : index
    %150 = vector.load %arg17[%c2_157, %c0_158] : memref<13x128xbf16, #tpu.memory_space<vmem>>, vector<6x128xbf16>
    %c2_159 = arith.constant 2 : index
    %c0_160 = arith.constant 0 : index
    %c0_161 = arith.constant 0 : index
    %151 = vector.load %arg8[%c2_159, %c0_160, %c0_161] : memref<8x128x128xbf16, #tpu.memory_space<vmem>>, vector<1x128x128xbf16>
    %152 = vector.shape_cast %151 : vector<1x128x128xbf16> to vector<128x128xbf16>
    %cst_162 = arith.constant dense<0.000000e+00> : vector<6x128xf32>
    %153 = tpu.matmul %150, %152, %cst_162 {dimension_numbers = #tpu.dot_dimension_numbers<[1], [0], [0], [1], [0, 0, 1, 1], [], []>} : vector<6x128xbf16>, vector<128x128xbf16>, vector<6x128xf32> -> vector<6x128xf32>
    %154 = arith.addf %149, %153 : vector<6x128xf32>
    %c3_163 = arith.constant 3 : index
    %c0_164 = arith.constant 0 : index
    %155 = vector.load %arg17[%c3_163, %c0_164] : memref<13x128xbf16, #tpu.memory_space<vmem>>, vector<6x128xbf16>
    %c3_165 = arith.constant 3 : index
    %c0_166 = arith.constant 0 : index
    %c0_167 = arith.constant 0 : index
    %156 = vector.load %arg8[%c3_165, %c0_166, %c0_167] : memref<8x128x128xbf16, #tpu.memory_space<vmem>>, vector<1x128x128xbf16>
    %157 = vector.shape_cast %156 : vector<1x128x128xbf16> to vector<128x128xbf16>
    %cst_168 = arith.constant dense<0.000000e+00> : vector<6x128xf32>
    %158 = tpu.matmul %155, %157, %cst_168 {dimension_numbers = #tpu.dot_dimension_numbers<[1], [0], [0], [1], [0, 0, 1, 1], [], []>} : vector<6x128xbf16>, vector<128x128xbf16>, vector<6x128xf32> -> vector<6x128xf32>
    %159 = arith.addf %154, %158 : vector<6x128xf32>
    %c4_169 = arith.constant 4 : index
    %c0_170 = arith.constant 0 : index
    %160 = vector.load %arg17[%c4_169, %c0_170] : memref<13x128xbf16, #tpu.memory_space<vmem>>, vector<6x128xbf16>
    %c4_171 = arith.constant 4 : index
    %c0_172 = arith.constant 0 : index
    %c0_173 = arith.constant 0 : index
    %161 = vector.load %arg8[%c4_171, %c0_172, %c0_173] : memref<8x128x128xbf16, #tpu.memory_space<vmem>>, vector<1x128x128xbf16>
    %162 = vector.shape_cast %161 : vector<1x128x128xbf16> to vector<128x128xbf16>
    %cst_174 = arith.constant dense<0.000000e+00> : vector<6x128xf32>
    %163 = tpu.matmul %160, %162, %cst_174 {dimension_numbers = #tpu.dot_dimension_numbers<[1], [0], [0], [1], [0, 0, 1, 1], [], []>} : vector<6x128xbf16>, vector<128x128xbf16>, vector<6x128xf32> -> vector<6x128xf32>
    %164 = arith.addf %159, %163 : vector<6x128xf32>
    %c5_175 = arith.constant 5 : index
    %c0_176 = arith.constant 0 : index
    %165 = vector.load %arg17[%c5_175, %c0_176] : memref<13x128xbf16, #tpu.memory_space<vmem>>, vector<6x128xbf16>
    %c5_177 = arith.constant 5 : index
    %c0_178 = arith.constant 0 : index
    %c0_179 = arith.constant 0 : index
    %166 = vector.load %arg8[%c5_177, %c0_178, %c0_179] : memref<8x128x128xbf16, #tpu.memory_space<vmem>>, vector<1x128x128xbf16>
    %167 = vector.shape_cast %166 : vector<1x128x128xbf16> to vector<128x128xbf16>
    %cst_180 = arith.constant dense<0.000000e+00> : vector<6x128xf32>
    %168 = tpu.matmul %165, %167, %cst_180 {dimension_numbers = #tpu.dot_dimension_numbers<[1], [0], [0], [1], [0, 0, 1, 1], [], []>} : vector<6x128xbf16>, vector<128x128xbf16>, vector<6x128xf32> -> vector<6x128xf32>
    %169 = arith.addf %164, %168 : vector<6x128xf32>
    %c6_181 = arith.constant 6 : index
    %c0_182 = arith.constant 0 : index
    %170 = vector.load %arg17[%c6_181, %c0_182] : memref<13x128xbf16, #tpu.memory_space<vmem>>, vector<6x128xbf16>
    %c6_183 = arith.constant 6 : index
    %c0_184 = arith.constant 0 : index
    %c0_185 = arith.constant 0 : index
    %171 = vector.load %arg8[%c6_183, %c0_184, %c0_185] : memref<8x128x128xbf16, #tpu.memory_space<vmem>>, vector<1x128x128xbf16>
    %172 = vector.shape_cast %171 : vector<1x128x128xbf16> to vector<128x128xbf16>
    %cst_186 = arith.constant dense<0.000000e+00> : vector<6x128xf32>
    %173 = tpu.matmul %170, %172, %cst_186 {dimension_numbers = #tpu.dot_dimension_numbers<[1], [0], [0], [1], [0, 0, 1, 1], [], []>} : vector<6x128xbf16>, vector<128x128xbf16>, vector<6x128xf32> -> vector<6x128xf32>
    %174 = arith.addf %169, %173 : vector<6x128xf32>
    %c7_187 = arith.constant 7 : index
    %c0_188 = arith.constant 0 : index
    %175 = vector.load %arg17[%c7_187, %c0_188] : memref<13x128xbf16, #tpu.memory_space<vmem>>, vector<6x128xbf16>
    %c7_189 = arith.constant 7 : index
    %c0_190 = arith.constant 0 : index
    %c0_191 = arith.constant 0 : index
    %176 = vector.load %arg8[%c7_189, %c0_190, %c0_191] : memref<8x128x128xbf16, #tpu.memory_space<vmem>>, vector<1x128x128xbf16>
    %177 = vector.shape_cast %176 : vector<1x128x128xbf16> to vector<128x128xbf16>
    %cst_192 = arith.constant dense<0.000000e+00> : vector<6x128xf32>
    %178 = tpu.matmul %175, %177, %cst_192 {dimension_numbers = #tpu.dot_dimension_numbers<[1], [0], [0], [1], [0, 0, 1, 1], [], []>} : vector<6x128xbf16>, vector<128x128xbf16>, vector<6x128xf32> -> vector<6x128xf32>
    %179 = arith.addf %174, %178 : vector<6x128xf32>
    %c0_193 = arith.constant 0 : index
    %c0_194 = arith.constant 0 : index
    %180 = vector.load %arg9[%c0_193, %c0_194] : memref<1x128xf32, #tpu.memory_space<vmem>>, vector<1x128xf32>
    %181 = vector.broadcast %180 : vector<1x128xf32> to vector<6x128xf32>
    %182 = arith.mulf %179, %181 : vector<6x128xf32>
    %c0_195 = arith.constant 0 : index
    %c0_196 = arith.constant 0 : index
    %183 = vector.load %arg10[%c0_195, %c0_196] : memref<1x128xf32, #tpu.memory_space<vmem>>, vector<1x128xf32>
    %184 = vector.broadcast %183 : vector<1x128xf32> to vector<6x128xf32>
    %185 = arith.addf %182, %184 : vector<6x128xf32>
    %cst_197 = arith.constant 0.000000e+00 : f32
    %186 = vector.broadcast %cst_197 : f32 to vector<6x128xf32>
    %187 = arith.maximumf %185, %186 : vector<6x128xf32>
    %cst_198 = arith.constant 0.000000e+00 : bf16
    %188 = vector.broadcast %cst_198 : bf16 to vector<13x128xbf16>
    %c0_199 = arith.constant 0 : index
    %c0_200 = arith.constant 0 : index
    %189 = vector.load %arg18[%c0_199, %c0_200] : memref<13x128xbf16, #tpu.memory_space<vmem>>, vector<13x128xbf16>
    tpu.vector_store %arg18[%c0_199, %c0_200], %188 {strides = array<i32>} : memref<13x128xbf16, #tpu.memory_space<vmem>>, vector<13x128xbf16>,
    %190 = arith.truncf %187 : vector<6x128xf32> to vector<6x128xbf16>
    %c3_201 = arith.constant 3 : index
    %c0_202 = arith.constant 0 : index
    %191 = vector.load %arg18[%c3_201, %c0_202] : memref<13x128xbf16, #tpu.memory_space<vmem>>, vector<6x128xbf16>
    tpu.vector_store %arg18[%c3_201, %c0_202], %190 {strides = array<i32>} : memref<13x128xbf16, #tpu.memory_space<vmem>>, vector<6x128xbf16>,
    %cst_203 = arith.constant 0.000000e+00 : f32
    %192 = vector.broadcast %cst_203 : f32 to vector<6x128xf32>
    %c0_204 = arith.constant 0 : index
    %c0_205 = arith.constant 0 : index
    %193 = vector.load %arg18[%c0_204, %c0_205] : memref<13x128xbf16, #tpu.memory_space<vmem>>, vector<6x128xbf16>
    %c0_206 = arith.constant 0 : index
    %c0_207 = arith.constant 0 : index
    %c0_208 = arith.constant 0 : index
    %194 = vector.load %arg11[%c0_206, %c0_207, %c0_208] : memref<8x128x128xbf16, #tpu.memory_space<vmem>>, vector<1x128x128xbf16>
    %195 = vector.shape_cast %194 : vector<1x128x128xbf16> to vector<128x128xbf16>
    %cst_209 = arith.constant dense<0.000000e+00> : vector<6x128xf32>
    %196 = tpu.matmul %193, %195, %cst_209 {dimension_numbers = #tpu.dot_dimension_numbers<[1], [0], [0], [1], [0, 0, 1, 1], [], []>} : vector<6x128xbf16>, vector<128x128xbf16>, vector<6x128xf32> -> vector<6x128xf32>
    %197 = arith.addf %192, %196 : vector<6x128xf32>
    %c1_210 = arith.constant 1 : index
    %c0_211 = arith.constant 0 : index
    %198 = vector.load %arg18[%c1_210, %c0_211] : memref<13x128xbf16, #tpu.memory_space<vmem>>, vector<6x128xbf16>
    %c1_212 = arith.constant 1 : index
    %c0_213 = arith.constant 0 : index
    %c0_214 = arith.constant 0 : index
    %199 = vector.load %arg11[%c1_212, %c0_213, %c0_214] : memref<8x128x128xbf16, #tpu.memory_space<vmem>>, vector<1x128x128xbf16>
    %200 = vector.shape_cast %199 : vector<1x128x128xbf16> to vector<128x128xbf16>
    %cst_215 = arith.constant dense<0.000000e+00> : vector<6x128xf32>
    %201 = tpu.matmul %198, %200, %cst_215 {dimension_numbers = #tpu.dot_dimension_numbers<[1], [0], [0], [1], [0, 0, 1, 1], [], []>} : vector<6x128xbf16>, vector<128x128xbf16>, vector<6x128xf32> -> vector<6x128xf32>
    %202 = arith.addf %197, %201 : vector<6x128xf32>
    %c2_216 = arith.constant 2 : index
    %c0_217 = arith.constant 0 : index
    %203 = vector.load %arg18[%c2_216, %c0_217] : memref<13x128xbf16, #tpu.memory_space<vmem>>, vector<6x128xbf16>
    %c2_218 = arith.constant 2 : index
    %c0_219 = arith.constant 0 : index
    %c0_220 = arith.constant 0 : index
    %204 = vector.load %arg11[%c2_218, %c0_219, %c0_220] : memref<8x128x128xbf16, #tpu.memory_space<vmem>>, vector<1x128x128xbf16>
    %205 = vector.shape_cast %204 : vector<1x128x128xbf16> to vector<128x128xbf16>
    %cst_221 = arith.constant dense<0.000000e+00> : vector<6x128xf32>
    %206 = tpu.matmul %203, %205, %cst_221 {dimension_numbers = #tpu.dot_dimension_numbers<[1], [0], [0], [1], [0, 0, 1, 1], [], []>} : vector<6x128xbf16>, vector<128x128xbf16>, vector<6x128xf32> -> vector<6x128xf32>
    %207 = arith.addf %202, %206 : vector<6x128xf32>
    %c3_222 = arith.constant 3 : index
    %c0_223 = arith.constant 0 : index
    %208 = vector.load %arg18[%c3_222, %c0_223] : memref<13x128xbf16, #tpu.memory_space<vmem>>, vector<6x128xbf16>
    %c3_224 = arith.constant 3 : index
    %c0_225 = arith.constant 0 : index
    %c0_226 = arith.constant 0 : index
    %209 = vector.load %arg11[%c3_224, %c0_225, %c0_226] : memref<8x128x128xbf16, #tpu.memory_space<vmem>>, vector<1x128x128xbf16>
    %210 = vector.shape_cast %209 : vector<1x128x128xbf16> to vector<128x128xbf16>
    %cst_227 = arith.constant dense<0.000000e+00> : vector<6x128xf32>
    %211 = tpu.matmul %208, %210, %cst_227 {dimension_numbers = #tpu.dot_dimension_numbers<[1], [0], [0], [1], [0, 0, 1, 1], [], []>} : vector<6x128xbf16>, vector<128x128xbf16>, vector<6x128xf32> -> vector<6x128xf32>
    %212 = arith.addf %207, %211 : vector<6x128xf32>
    %c4_228 = arith.constant 4 : index
    %c0_229 = arith.constant 0 : index
    %213 = vector.load %arg18[%c4_228, %c0_229] : memref<13x128xbf16, #tpu.memory_space<vmem>>, vector<6x128xbf16>
    %c4_230 = arith.constant 4 : index
    %c0_231 = arith.constant 0 : index
    %c0_232 = arith.constant 0 : index
    %214 = vector.load %arg11[%c4_230, %c0_231, %c0_232] : memref<8x128x128xbf16, #tpu.memory_space<vmem>>, vector<1x128x128xbf16>
    %215 = vector.shape_cast %214 : vector<1x128x128xbf16> to vector<128x128xbf16>
    %cst_233 = arith.constant dense<0.000000e+00> : vector<6x128xf32>
    %216 = tpu.matmul %213, %215, %cst_233 {dimension_numbers = #tpu.dot_dimension_numbers<[1], [0], [0], [1], [0, 0, 1, 1], [], []>} : vector<6x128xbf16>, vector<128x128xbf16>, vector<6x128xf32> -> vector<6x128xf32>
    %217 = arith.addf %212, %216 : vector<6x128xf32>
    %c5_234 = arith.constant 5 : index
    %c0_235 = arith.constant 0 : index
    %218 = vector.load %arg18[%c5_234, %c0_235] : memref<13x128xbf16, #tpu.memory_space<vmem>>, vector<6x128xbf16>
    %c5_236 = arith.constant 5 : index
    %c0_237 = arith.constant 0 : index
    %c0_238 = arith.constant 0 : index
    %219 = vector.load %arg11[%c5_236, %c0_237, %c0_238] : memref<8x128x128xbf16, #tpu.memory_space<vmem>>, vector<1x128x128xbf16>
    %220 = vector.shape_cast %219 : vector<1x128x128xbf16> to vector<128x128xbf16>
    %cst_239 = arith.constant dense<0.000000e+00> : vector<6x128xf32>
    %221 = tpu.matmul %218, %220, %cst_239 {dimension_numbers = #tpu.dot_dimension_numbers<[1], [0], [0], [1], [0, 0, 1, 1], [], []>} : vector<6x128xbf16>, vector<128x128xbf16>, vector<6x128xf32> -> vector<6x128xf32>
    %222 = arith.addf %217, %221 : vector<6x128xf32>
    %c6_240 = arith.constant 6 : index
    %c0_241 = arith.constant 0 : index
    %223 = vector.load %arg18[%c6_240, %c0_241] : memref<13x128xbf16, #tpu.memory_space<vmem>>, vector<6x128xbf16>
    %c6_242 = arith.constant 6 : index
    %c0_243 = arith.constant 0 : index
    %c0_244 = arith.constant 0 : index
    %224 = vector.load %arg11[%c6_242, %c0_243, %c0_244] : memref<8x128x128xbf16, #tpu.memory_space<vmem>>, vector<1x128x128xbf16>
    %225 = vector.shape_cast %224 : vector<1x128x128xbf16> to vector<128x128xbf16>
    %cst_245 = arith.constant dense<0.000000e+00> : vector<6x128xf32>
    %226 = tpu.matmul %223, %225, %cst_245 {dimension_numbers = #tpu.dot_dimension_numbers<[1], [0], [0], [1], [0, 0, 1, 1], [], []>} : vector<6x128xbf16>, vector<128x128xbf16>, vector<6x128xf32> -> vector<6x128xf32>
    %227 = arith.addf %222, %226 : vector<6x128xf32>
    %c7_246 = arith.constant 7 : index
    %c0_247 = arith.constant 0 : index
    %228 = vector.load %arg18[%c7_246, %c0_247] : memref<13x128xbf16, #tpu.memory_space<vmem>>, vector<6x128xbf16>
    %c7_248 = arith.constant 7 : index
    %c0_249 = arith.constant 0 : index
    %c0_250 = arith.constant 0 : index
    %229 = vector.load %arg11[%c7_248, %c0_249, %c0_250] : memref<8x128x128xbf16, #tpu.memory_space<vmem>>, vector<1x128x128xbf16>
    %230 = vector.shape_cast %229 : vector<1x128x128xbf16> to vector<128x128xbf16>
    %cst_251 = arith.constant dense<0.000000e+00> : vector<6x128xf32>
    %231 = tpu.matmul %228, %230, %cst_251 {dimension_numbers = #tpu.dot_dimension_numbers<[1], [0], [0], [1], [0, 0, 1, 1], [], []>} : vector<6x128xbf16>, vector<128x128xbf16>, vector<6x128xf32> -> vector<6x128xf32>
    %232 = arith.addf %227, %231 : vector<6x128xf32>
    %c0_252 = arith.constant 0 : index
    %c0_253 = arith.constant 0 : index
    %233 = vector.load %arg12[%c0_252, %c0_253] : memref<1x128xf32, #tpu.memory_space<vmem>>, vector<1x128xf32>
    %234 = vector.broadcast %233 : vector<1x128xf32> to vector<6x128xf32>
    %235 = arith.mulf %232, %234 : vector<6x128xf32>
    %c0_254 = arith.constant 0 : index
    %c0_255 = arith.constant 0 : index
    %236 = vector.load %arg13[%c0_254, %c0_255] : memref<1x128xf32, #tpu.memory_space<vmem>>, vector<1x128xf32>
    %237 = vector.broadcast %236 : vector<1x128xf32> to vector<6x128xf32>
    %238 = arith.addf %235, %237 : vector<6x128xf32>
    %cst_256 = arith.constant 0.000000e+00 : f32
    %239 = vector.broadcast %cst_256 : f32 to vector<6x128xf32>
    %240 = arith.maximumf %238, %239 : vector<6x128xf32>
    %cst_257 = arith.constant 0xFF800000 : f32
    %241 = vector.broadcast %cst_257 : f32 to vector<8x128xf32>
    %c0_258 = arith.constant 0 : index
    %c0_259 = arith.constant 0 : index
    %242 = vector.load %arg19[%c0_258, %c0_259] : memref<8x128xf32, #tpu.memory_space<vmem>>, vector<8x128xf32>
    tpu.vector_store %arg19[%c0_258, %c0_259], %241 {strides = array<i32>} : memref<8x128xf32, #tpu.memory_space<vmem>>, vector<8x128xf32>,
    %c1_260 = arith.constant 1 : index
    %c0_261 = arith.constant 0 : index
    %243 = vector.load %arg19[%c1_260, %c0_261] : memref<8x128xf32, #tpu.memory_space<vmem>>, vector<6x128xf32>
    tpu.vector_store %arg19[%c1_260, %c0_261], %240 {strides = array<i32>} : memref<8x128xf32, #tpu.memory_space<vmem>>, vector<6x128xf32>,
    %c0_262 = arith.constant 0 : index
    %c0_263 = arith.constant 0 : index
    %244 = tpu.strided_load %arg19[%c0_262, %c0_263] {strides = array<i32: 4, 1>} : memref<8x128xf32, #tpu.memory_space<vmem>>, vector<2x128xf32>
    %c1_264 = arith.constant 1 : index
    %c0_265 = arith.constant 0 : index
    %245 = tpu.strided_load %arg19[%c1_264, %c0_265] {strides = array<i32: 4, 1>} : memref<8x128xf32, #tpu.memory_space<vmem>>, vector<2x128xf32>
    %246 = arith.maximumf %244, %245 : vector<2x128xf32>
    %c2_266 = arith.constant 2 : index
    %c0_267 = arith.constant 0 : index
    %247 = tpu.strided_load %arg19[%c2_266, %c0_267] {strides = array<i32: 4, 1>} : memref<8x128xf32, #tpu.memory_space<vmem>>, vector<2x128xf32>
    %248 = arith.maximumf %246, %247 : vector<2x128xf32>
    %c3_268 = arith.constant 3 : index
    %c0_269 = arith.constant 0 : index
    %249 = tpu.strided_load %arg19[%c3_268, %c0_269] {strides = array<i32: 4, 1>} : memref<8x128xf32, #tpu.memory_space<vmem>>, vector<2x128xf32>
    %250 = arith.maximumf %248, %249 : vector<2x128xf32>
    %c0_270 = arith.constant 0 : index
    %c0_271 = arith.constant 0 : index
    %c0_272 = arith.constant 0 : index
    %251 = vector.load %arg14[%c0_270, %c0_271, %c0_272] : memref<1x2x128xf32, #tpu.memory_space<vmem>>, vector<1x2x128xf32>
    %252 = vector.shape_cast %251 : vector<1x2x128xf32> to vector<2x128xf32>
    %253 = vector.shape_cast %250 : vector<2x128xf32> to vector<1x2x128xf32>
    tpu.vector_store %arg14[%c0_270, %c0_271, %c0_272], %253 {strides = array<i32>} : memref<1x2x128xf32, #tpu.memory_space<vmem>>, vector<1x2x128xf32>,
    return
  }
  func.func @transform_0(%arg0: i32) -> (i32, i32, i32) {
    %c0_i32 = arith.constant 0 : i32
    %c0_i32_0 = arith.constant 0 : i32
    %c0_i32_1 = arith.constant 0 : i32
    return %arg0, %c0_i32, %c0_i32_0 : i32, i32, i32
  }
  func.func @transform_1(%arg0: i32) -> (i32, i32, i32) {
    %c0_i32 = arith.constant 0 : i32
    %c0_i32_0 = arith.constant 0 : i32
    %c0_i32_1 = arith.constant 0 : i32
    %c0_i32_2 = arith.constant 0 : i32
    return %c0_i32, %c0_i32_0, %c0_i32_1 : i32, i32, i32
  }
  func.func @transform_2(%arg0: i32) -> (i32, i32) {
    %c0_i32 = arith.constant 0 : i32
    %c0_i32_0 = arith.constant 0 : i32
    %c0_i32_1 = arith.constant 0 : i32
    return %c0_i32, %c0_i32_0 : i32, i32
  }
  func.func @transform_3(%arg0: i32) -> (i32, i32) {
    %c0_i32 = arith.constant 0 : i32
    %c0_i32_0 = arith.constant 0 : i32
    %c0_i32_1 = arith.constant 0 : i32
    return %c0_i32, %c0_i32_0 : i32, i32
  }
  func.func @transform_4(%arg0: i32) -> (i32, i32, i32) {
    %c0_i32 = arith.constant 0 : i32
    %c0_i32_0 = arith.constant 0 : i32
    %c0_i32_1 = arith.constant 0 : i32
    %c0_i32_2 = arith.constant 0 : i32
    return %c0_i32, %c0_i32_0, %c0_i32_1 : i32, i32, i32
  }
  func.func @transform_5(%arg0: i32) -> (i32, i32) {
    %c0_i32 = arith.constant 0 : i32
    %c0_i32_0 = arith.constant 0 : i32
    %c0_i32_1 = arith.constant 0 : i32
    return %c0_i32, %c0_i32_0 : i32, i32
  }
  func.func @transform_6(%arg0: i32) -> (i32, i32) {
    %c0_i32 = arith.constant 0 : i32
    %c0_i32_0 = arith.constant 0 : i32
    %c0_i32_1 = arith.constant 0 : i32
    return %c0_i32, %c0_i32_0 : i32, i32
  }
  func.func @transform_7(%arg0: i32) -> (i32, i32, i32) {
    %c0_i32 = arith.constant 0 : i32
    %c0_i32_0 = arith.constant 0 : i32
    %c0_i32_1 = arith.constant 0 : i32
    %c0_i32_2 = arith.constant 0 : i32
    return %c0_i32, %c0_i32_0, %c0_i32_1 : i32, i32, i32
  }
  func.func @transform_8(%arg0: i32) -> (i32, i32) {
    %c0_i32 = arith.constant 0 : i32
    %c0_i32_0 = arith.constant 0 : i32
    %c0_i32_1 = arith.constant 0 : i32
    return %c0_i32, %c0_i32_0 : i32, i32
  }
  func.func @transform_9(%arg0: i32) -> (i32, i32) {
    %c0_i32 = arith.constant 0 : i32
    %c0_i32_0 = arith.constant 0 : i32
    %c0_i32_1 = arith.constant 0 : i32
    return %c0_i32, %c0_i32_0 : i32, i32
  }
  func.func @transform_10(%arg0: i32) -> (i32, i32, i32) {
    %c0_i32 = arith.constant 0 : i32
    %c0_i32_0 = arith.constant 0 : i32
    %c0_i32_1 = arith.constant 0 : i32
    %c0_i32_2 = arith.constant 0 : i32
    return %c0_i32, %c0_i32_0, %c0_i32_1 : i32, i32, i32
  }
  func.func @transform_11(%arg0: i32) -> (i32, i32) {
    %c0_i32 = arith.constant 0 : i32
    %c0_i32_0 = arith.constant 0 : i32
    %c0_i32_1 = arith.constant 0 : i32
    return %c0_i32, %c0_i32_0 : i32, i32
  }
  func.func @transform_12(%arg0: i32) -> (i32, i32) {
    %c0_i32 = arith.constant 0 : i32
    %c0_i32_0 = arith.constant 0 : i32
    %c0_i32_1 = arith.constant 0 : i32
    return %c0_i32, %c0_i32_0 : i32, i32
  }
  func.func @transform_13(%arg0: i32) -> (i32, i32, i32) {
    %c0_i32 = arith.constant 0 : i32
    %c0_i32_0 = arith.constant 0 : i32
    %c0_i32_1 = arith.constant 0 : i32
    return %arg0, %c0_i32, %c0_i32_0 : i32, i32, i32
  }
}

</mosaic_0001>

<bundles_post_ra>
// kernel: small_cnn_forward.1
= control target key start
LH: loop header
LB: loop body
LE: loop exit
PB: predicated region body
PF: predicated region fallthrough
CT: control target
= control target key end

     0   :  { %s5039_s0 = inlined_call_operand.vmem [shape: bf16[2,58,6], index: 0, kind: input, shape index: {}]   ;;  %s5040_s1 = inlined_call_operand.vmem [shape: bf16[9,6,64], index: 1, kind: input, shape index: {}]   ;;  %s5041_s2 = inlined_call_operand.vmem [shape: f32[1,64], index: 2, kind: input, shape index: {}]   ;;  %s5042_s3 = inlined_call_operand.vmem [shape: f32[1,64], index: 3, kind: input, shape index: {}]   ;;  %s5043_s4 = inlined_call_operand.hbm [shape: bf16[8,64,128], index: 4, kind: input, shape index: {}]   ;;  %s5044_s5 = inlined_call_operand.vmem [shape: f32[1,128], index: 5, kind: input, shape index: {}]   ;;  %s5045_s6 = inlined_call_operand.vmem [shape: f32[1,128], index: 6, kind: input, shape index: {}]   ;;  %s5046_s7 = inlined_call_operand.hbm [shape: bf16[8,128,128], index: 7, kind: input, shape index: {}]   ;;  %s5047_s8 = inlined_call_operand.vmem [shape: f32[1,128], index: 8, kind: input, shape index: {}]   ;;  %s5048_s9 = inlined_call_operand.vmem [shape: f32[1,128], index: 9, kind: input, shape index: {}]   ;;  %s5049_s10 = inlined_call_operand.hbm [shape: bf16[8,128,128], index: 10, kind: input, shape index: {}]   ;;  %s5050_s11 = inlined_call_operand.vmem [shape: f32[1,128], index: 11, kind: input, shape index: {}]   ;;  %s5051_s12 = inlined_call_operand.vmem [shape: f32[1,128], index: 12, kind: input, shape index: {}]   ;;  %s5052_s13 = inlined_call_operand.hbm [shape: f32[2,2,128], index: 13, kind: output, shape index: {}]  }
   0x1   :  { %5058 = sst [smem:[#allocation22_spill]] %s5043_s4 }
   0x2   :  { %5059 = sst [smem:[#allocation23_spill]] %s5046_s7 }
   0x3   :  { %18 = vsyncpa [#allocation8], 0 }
   0x4   :  { %19 = vsyncpa [#allocation11], 0 }
   0x5   :  { %20 = vsyncpa [#allocation9], 0 }
   0x6   :  { %22 = vsyncpa [#allocation9 + $0x1], 0  ;;  %s4552_s25 = smov 0   ;;  %s4554_s26 = smov 0  }
   0x7   :  { %s4556_s27 = smov 0   ;;  %s4558_s28 = smov 0  }
   0x8 LB: > { %5060 = sst [smem:[#allocation17_spill]] %s4461_s25  ;;  %s4573_s29 = sadd.s32 4294967295, %s4473_s28   ;;  %s4473_s28 = sphi %s4558_s28, %s5079_s28   ;;  %s4469_s27 = sphi %s4556_s27, %s5081_s27   ;;  %s4465_s26 = sphi %s4554_s26, %s5083_s26   ;;  %s4461_s25 = sphi %s4552_s25, %s5082_s25  }
   0x9   : > { %5061 = sst [smem:[#allocation18_spill]] %s4469_s27  ;;  %s3330_s30 = sadd.s32 4294967294, %s4473_s28  }
   0xa   : > { %s4577_s14 = sadd.s32 1, %s4473_s28   ;;  %s313_s15 = sadd.s32 1, %s4469_s27 }
   0xb   : > { %5062 = sst [smem:[#allocation19_spill]] %s4577_s14  ;;  %s310_s16 = ssub.s32 %s4473_s28, %s4577_s14 }
   0xc   : > { %p323_p0 = scmp.ne.s32.totalorder %s4469_s27, %s4465_s26  ;;  %p311_p1 = scmp.eq.s32.totalorder %s310_s16, 0 }
   0xd   : > { %p324_p2 = scmp.eq.s32.totalorder %s4573_s29, 1  ;;  %p329_p3 = scmp.ne.s32.totalorder %s4465_s26, %s4461_s25 }
   0xe   : > { %p330_p4 = scmp.eq.s32.totalorder %s3330_s30, 1  ;;  %p3331_p7 = scmp.ge.s32.totalorder %s4473_s28, 1 }
   0xf   : > { %s4588_s17 = scalar_select %p311_p1, %s4469_s27, %s313_s15  }
  0x10   : > { %p4590_p5 = por %p324_p2, %p323_p0  ;;  %p4594_p6 = por %p330_p4, %p329_p3 }
  0x11   : > { %5063 = sst [smem:[#allocation20_spill]] %s4588_s17  ;;  %p337_p8 = scmp.lt.s32.totalorder %s4473_s28, 3 }
  0x12   : > { %s5065_s19 = scalar_select %p4594_p6, 1, 0 }
  0x13   : > { %p4259_p9 = scmp.eq.s32.totalorder %s4573_s29, 0  ;;  %p4601_p10 = pnand %p3331_p7, %p337_p8 }
  0x14   : > { %5066 = sst [smem:[#allocation21_spill]] %s5065_s19  ;;  %s4475_s17 = smov [#allocation10]  }
  0x15   : > { %s5068_s7 = sld [smem:[#allocation23_spill]]  ;;  %p4245_p11 = pneg %p4601_p10 }
  0x16   : > { %s5069_s4 = sld [smem:[#allocation22_spill]]  ;;  %s379_s27 = sshll.u32 %s4475_s17, 4  ;;  %s380_s27 = int_to_ptr.vmem [resolvable:$true] %s379_s27 }
  0x17   : > { %p4615_p12 = pnand %p4259_p9, %p4245_p11  ;;  %s4476_s21 = smov 64  }
  0x18   : > { %s4477_s22 = smov 4   ;;  %s4479_s19 = smov [#allocation12]  }
  0x19   : > { %s399_s25 = sshll.u32 %s4479_s19, 4  ;;  %s400_s25 = int_to_ptr.vmem [resolvable:$true] %s399_s25 }
  0x1b   : > { %s377_s23 = sshll.u32 %s5068_s7, 4  ;;  %s4478_s7 = smov [#allocation7]   ;;  %s378_s23 = int_to_ptr.hbm [resolvable:$true] %s377_s23 }
  0x1c   : > { %s357_s15 = sshll.u32 %s5069_s4, 4  ;;  %s359_s14 = sshll.u32 %s4478_s7, 4  ;;  %s358_s15 = int_to_ptr.hbm [resolvable:$true] %s357_s15  ;;  %s360_s14 = int_to_ptr.vmem [resolvable:$true] %s359_s14 }
  0x1d   : > { %4251 = dma.hbm_to_vmem [thread:$0]  (!%p4615_p12), %s378_s23, 8192, %s380_s27, [#allocation11], %s4476_s21, %s4476_s21, %s4477_s22  }
  0x1e   : > { %s397_s4 = sshll.u32 %s5049_s10, 4  ;;  %429 = sbr.rel (%p4601_p10) target bundleno = 972 (0x3cc), region = 72  ;;  %s398_s4 = int_to_ptr.hbm [resolvable:$true] %s397_s4 }
  0x1f   : > { %4248 = dma.hbm_to_vmem [thread:$0]  (!%p4615_p12), %s358_s15, 4096, %s360_s14, [#allocation8], %s4476_s21, %s4476_s21, %s4477_s22  }
  0x20   : > { %4254 = dma.hbm_to_vmem [thread:$0]  (!%p4615_p12), %s398_s4, 8192, %s400_s25, [#allocation11], %s4476_s21, %s4476_s21, %s4477_s22  }
  0x23   : > { %4448 = dma.done.wait (%p4259_p9), [#allocation8], 4096  }
  0x24   : > { %4450 = vsyncadd (%p4259_p9), [#allocation8], 4294963200 }
  0x25   : > { %4452 = dma.done.wait (%p4259_p9), [#allocation11], 16384  }
  0x26   : > { %4454 = vsyncadd (%p4259_p9), [#allocation11], 4294950912  ;;  %p484_p13 = scmp.lt.s32.totalorder %s4573_s29, 1  ;;  %vm564_vm0 = vcmask 1042432   ;;  %v3343_v0 = vld [vmem:[%s5040_s1 + $0x4] sm:$0x7] }
  0x27   : > { %v497_v1 = vld [vmem:[%s5040_s1] sm:$0x7]  ;;  %v3360_v2 = vld [vmem:[%s5040_s1 + $0x8] sm:$0x7]  ;;  %v566_v3 = vsel %vm564_vm0, %v3343_v0, 0  ;;  %vm551_vm1 = vcmask 48128  }
  0x28   : > { %s485_s7 = scalar_select %p484_p13, %s4573_s29, 1  ;;  %v608_v4 = vsel %vm564_vm0, %v497_v1, 0  ;;  %v664_v5 = vsel %vm564_vm0, %v3360_v2, 0  ;;  %575 = vmatpush.bf16.msra.mxu0 %v566_v3  ;;  %v3370_v12 = vld [vmem:[%s5040_s1 + $0x10] sm:$0x7]  ;;  %vm643_vm3 = vcmask 1046528  }
  0x29   : > { %617 = vmatpush.bf16.msra.mxu1 %v608_v4  ;;  %673 = vmatpush.bf16.msra.mxu2 %v664_v5  ;;  %v806_v15 = vsel %vm564_vm0, %v3370_v12, 0  ;;  %v3365_v16 = vld [vmem:[%s5040_s1 + $0xc] sm:$0x7]  ;;  %vm519_vm2 = vsmask.f32 7424  ;;  %vm927_vm5 = vcmask 1044480  }
  0x2a   : > { %s4047_s4 = sshll.u32 %s485_s7, 5  ;;  %v744_v18 = vsel %vm564_vm0, %v3365_v16, 0  ;;  %vm705_vm4 = vsmask.f32 6400  ;;  %v3380_v56 = vld [vmem:[%s5040_s1 + $0x18] sm:$0x7] }
  0x2b   : > { %s4643_s14 = scalar_lea.vmem %s5039_s0, %s4047_s4  ;;  %753 = vmatpush.bf16.msra.mxu3 %v744_v18  ;;  %v3385_v57 = vld [vmem:[%s5040_s1 + $0x1c] sm:$0x7]  ;;  %v3375_v58 = vld [vmem:[%s5040_s1 + $0x14] sm:$0x7]  ;;  %v948_v60 = vsel %vm564_vm0, %v3380_v56, 0  ;;  %vm785_vm6 = vcmask 1045504  }
  0x2c   : > { %v4211_v6 = vld [vmem:[%s4643_s14] sm:$0xff]   ;;  %v4659_v7 = vld [vmem:[%s4643_s14 + $0x8] sm:$0xff]  ;;  %815 = vmatpush.bf16.msrb.mxu0 %v806_v15  ;;  %v4689_v34 = vld [vmem:[%s4643_s14 + $0x10] sm:$0xff]  ;;  %v1062_v61 = vsel %vm564_vm0, %v3385_v57, 0  ;;  %v886_v62 = vsel %vm564_vm0, %v3375_v58, 0  ;;  %vm1177_vm9 = vcmask 523264  }
  0x2d   : > { %v521_v8 = vshrl.u32 %v4211_v6, 16  ;;  %v523_v9 = vshll.u32 %v4211_v6, 16  ;;  %v4661_v10 = vunpack.c.h.b16 %v4211_v6  ;;  %v637_v11 = vld [vmem:[%s4643_s14] sm:$0xe]  ;;  %v4668_v13 = vshll.u32 %v4659_v7, 16  ;;  %3356 = vmatmul.msk.bf16.vlgmr.msra.gmra.mxu1 %vm551_vm1, %v4211_v6  ;;  %957 = vmatpush.bf16.msrb.mxu2 %v948_v60  ;;  %s481_s15 = sand.u32 1, %s4465_s26  }
  0x2e   : > { %v641_v14 = vunpack.c.l.b16 %v637_v11  ;;  %v4676_v19 = vshrl.u32 %v4659_v7, 16  ;;  %v645_v22 = vrot.slane %v4659_v7, 1  ;;  %v4694_v37 = vshll.u32 %v4689_v34, 16  ;;  %v498_v41 = vld [vmem:[%s4643_s14 + $0x18] sm:$0x3]  ;;  %895 = vmatpush.bf16.msrb.mxu1 %v886_v62  ;;  %s3340_s16 = sshll.u32 %s481_s15, 1 }
  0x2f   : > { %v525_v17 = vrot.slane %v523_v9, 1  ;;  %v530_v20 = vrot.slane %v4668_v13, 1  ;;  %v715_v23 = vrot.slane %v4668_v13, 2  ;;  %v4697_v38 = vshrl.u32 %v4689_v34, 16  ;;  %v699_v42 = vld [vmem:[%s4643_s14 + $0x18] sm:$0x7]  ;;  %1071 = vmatpush.bf16.msrb.mxu3 %v1062_v61 }
  0x30   : > { %v642_v21 = vpack.c.b16 %v4661_v10, %v641_v14  ;;  %v714_v25 = vrot.slane %v4676_v19, 1  ;;  %v538_v40 = vrot.slane %v4694_v37, 1  ;;  %v647_v43 = vrot.slane %v4689_v34, 1  ;;  %v921_v1 = vld [vmem:[%s4643_s14] sm:$0x8]  ;;  %s4044_s21 = sshll.u32 %s4573_s29, 1 }
  0x31   : > { %v526_v24 = vor.u32 %v525_v17, %v521_v8  ;;  %v534_v39 = vor.u32 %v4676_v19, %v530_v20  ;;  %v718_v44 = vrot.slane %v4697_v38, 1  ;;  %v719_v45 = vrot.slane %v4694_v37, 2  ;;  %v496_v16 = vld [vmem:[%s4643_s14 + $0x18] sm:$0x1]  ;;  %v3390_v17 = vld [vmem:[%s5040_s1 + $0x20] sm:$0x7]  ;;  %s3235_s30 = scalar_lea.hbm %s5052_s13, %s4044_s21 }
  0x32   : > { %v644_v26 = vrot.slane %v642_v21, 1  ;;  %v707_v27 = vshrl.u32 %v642_v21, 16  ;;  %v710_v28 = vshll.u32 %v642_v21, 16  ;;  %v716_v33 = vor.u32 %v715_v23, %v714_v25  ;;  %s483_s7 = scalar_lea.vmem [#allocation13], %s3340_s16  ;;  %s3239_s25 = sshll.u32 %s3235_s30, 4  ;;  %s3240_s25 = int_to_ptr.hbm [resolvable:$true] %s3239_s25 }
  0x33   : > { %v531_v29 = vsel %vm519_vm2, %v526_v24, %v530_v20  ;;  %v514_v46 = vunpack.c.l.b16 %v498_v41  ;;  %v703_v47 = vunpack.c.l.b16 %v699_v42  ;;  %v539_v48 = vsel %vm519_vm2, %v534_v39, %v538_v40  ;;  %v779_v20 = vld [vmem:[%s4643_s14] sm:$0xc]  ;;  %s3237_s4 = sshll.u32 %s483_s7, 4  ;;  %s3225_s27 = scalar_lea.sflag [#allocation9], %s481_s15  ;;  %s3238_s4 = int_to_ptr.vmem [resolvable:$true] %s3237_s4 }
  0x34   : > { %3352 = vmatmul.msk.bf16.vlgmr.msra.gmra.mxu0 %vm551_vm1, %v531_v29  ;;  %v646_v30 = vsel %vm643_vm3, %v644_v26, %v645_v22  ;;  %v709_v31 = vrot.slane %v707_v27, 1  ;;  %v712_v32 = vrot.slane %v710_v28, 2  ;;  %v648_v49 = vsel %vm643_vm3, %v645_v22, %v647_v43  ;;  %s4417_s29 = sshra.s32 %s3240_s25, 4  ;;  %s4423_s23 = scalar_lea.hbm %s5052_s13, 4  ;;  %s4418_s29 = int_to_ptr.hbm [resolvable:$true] %s4417_s29 }
  0x35   : > { %3361 = vmatmul.msk.bf16.vlgmr.msra.gmra.mxu2 %vm551_vm1, %v646_v30  ;;  %v720_v50 = vor.u32 %v719_v45, %v718_v44  ;;  %v4711_v51 = vpack.c.b16 %v514_v46, %v514_v46  ;;  %v4713_v52 = vpack.c.b16 %v703_v47, %v703_v47  ;;  %v542_v63 = vor.u32 %v4697_v38, %v538_v40  ;;  %v983_v30 = vld [vmem:[%s4643_s14] sm:$0x8]  ;;  %v4777_v45 = vld [vmem:[%s4643_s14 + $0x8] sm:$0xff]   ;;  %s4419_s17 = scalar_lea.hbm %s4418_s29, 2  ;;  %p4424_p3 = scmp.lt.s32.totalorder %s4418_s29, %s5052_s13 }
  0x36   : > { %v713_v35 = vor.u32 %v712_v32, %v709_v31  ;;  %v925_v5 = vunpack.c.l.b16 %v921_v1  ;;  %v929_v14 = vrot.slane %v4659_v7, 3  ;;  %v1116_v21 = vsel %vm564_vm0, %v3390_v17, 0  ;;  %v4762_v31 = vld [vmem:[%s4643_s14 + $0x4] sm:$0xf]  ;;  %v841_v1 = vld [vmem:[%s4643_s14 + $0x18] sm:$0xf]  ;;  %p4420_p0 = scmp.ne.s32.totalorder %s4418_s29, %s4419_s17  ;;  %p4425_p4 = scmp.lt.s32.totalorder %s4423_s23, %s4419_s17 }
  0x37   : > { %v721_v53 = vsel %vm705_vm4, %v716_v33, %v720_v50  ;;  %v544_v54 = vshll.u32 %v4711_v51, 16  ;;  %v723_v55 = vshrl.u32 %v4713_v52, 16  ;;  %v726_v59 = vshll.u32 %v4713_v52, 16  ;;  %1125 = vmatpush.bf16.msra.mxu0 %v1116_v21 }
  0x38   : > { %v717_v36 = vsel %vm705_vm4, %v713_v35, %v716_v33  ;;  %v649_v2 = vrot.slane %v4711_v51, 1  ;;  %v926_v6 = vpack.c.b16 %v4661_v10, %v925_v5  ;;  %v596_v22 = vunpack.c.l.b16 %v496_v16  ;;  %p4421_p1 = pnand %p4420_p0, %p4590_p5  ;;  %p4426_p7 = por %p4425_p4, %p4424_p3 }
  0x39   : > { %3366 = vmatmul.msk.bf16.vlgmr.msra.gmra.mxu3 %vm551_vm1, %v717_v36  ;;  %v546_v0 = vrot.slane %v544_v54, 1  ;;  %v725_v3 = vrot.slane %v723_v55, 1  ;;  %v728_v4 = vrot.slane %v726_v59, 2  ;;  %v783_v23 = vunpack.c.l.b16 %v779_v20 }
  0x3a   : > { %v650_v9 = vsel %vm643_vm3, %v647_v43, %v649_v2  ;;  %v928_v12 = vrot.slane %v926_v6, 3  ;;  %v787_v24 = vrot.slane %v4659_v7, 2  ;;  %v789_v25 = vrot.slane %v4689_v34, 2  ;;  %p4422_p2 = pneg %p4421_p1 }
  0x3b   : > { %v547_v8 = vsel %vm519_vm2, %v542_v63, %v546_v0  ;;  %v729_v11 = vor.u32 %v728_v4, %v725_v3  ;;  %v548_v27 = vshrl.u32 %v4711_v51, 16  ;;  %v597_v28 = vpack.c.b16 %v596_v22, %v596_v22 }
  0x3c   : > { %v930_v15 = vsel %vm927_vm5, %v928_v12, %v929_v14  ;;  %v4756_v26 = vsel %vm785_vm6, %v787_v24, %v789_v25  ;;  %v784_v29 = vpack.c.b16 %v4661_v10, %v783_v23  ;;  %v1001_v33 = vunpack.c.l.b16 %v983_v30  ;;  %v989_v12 = vld [vmem:[%s4643_s14 + $0x18] sm:$0xf]  ;;  %p4427_p8 = pnand %p4426_p7, %p4422_p2 }
  0x3d   : > { %3357 = vmatmul.msk.bf16.gmra.mxu1 %vm551_vm1, %v4659_v7  ;;  %v730_v18 = vsel %vm705_vm4, %v720_v50, %v729_v11  ;;  %v550_v32 = vor.u32 %v548_v27, %v546_v0  ;;  %v1002_v7 = vunpack.c.l.b16 %v4762_v31  ;;  %v931_v39 = vrot.slane %v4689_v34, 3 }
  0x3e   : > { %v849_v35 = vshrl.u32 %v784_v29, 16  ;;  %v852_v36 = vshll.u32 %v784_v29, 16  ;;  %v856_v43 = vrot.slane %v4676_v19, 2  ;;  %v857_v44 = vrot.slane %v4668_v13, 3 }
  0x3f   : > { %v1009_v40 = vpack.c.b16 %v1002_v7, %v1001_v33  ;;  %v932_v10 = vsel %vm927_vm5, %v929_v14, %v931_v39  ;;  %vm847_vm7 = vsmask.f32 5376  ;;  %v1023_v51 = vshrl.u32 %v4777_v45, 16 }
  0x40   : > { %v851_v41 = vrot.slane %v849_v35, 2  ;;  %v854_v42 = vrot.slane %v852_v36, 3  ;;  %v858_v47 = vor.u32 %v857_v44, %v856_v43  ;;  %v786_v13 = vrot.slane %v784_v29, 2 }
  0x41   : > { %v1018_v50 = vshll.u32 %v1009_v40, 16  ;;  %v1025_v57 = vrot.slane %v1023_v51, 3  ;;  %vm1013_vm8 = vsmask.f32 4352  ;;  %v860_v62 = vrot.slane %v4697_v38, 2 }
  0x42   : > { %v855_v46 = vor.u32 %v854_v42, %v851_v41  ;;  %v788_v59 = vsel %vm785_vm6, %v786_v13, %v787_v24  ;;  %v861_v63 = vrot.slane %v4694_v37, 3  ;;  %v845_v4 = vunpack.c.l.b16 %v841_v1  ;;  %v990_v37 = vld [vmem:[%s4643_s14 + $0x1c] sm:$0x1] }
  0x43   : > { %v1020_v56 = vrot.slane %v1018_v50, 4  ;;  %v1007_v17 = vunpack.c.l.b16 %v989_v12  ;;  %vm1229_vm10 = vcmask 519168   ;;  %vm1231_vm11 = vcmask 518144  }
  0x44   : > { %3353 = vmatmul.msk.bf16.gmra.mxu0 %vm551_vm1, %v539_v48  ;;  %v1015_v48 = vshrl.u32 %v1009_v40, 16  ;;  %v859_v54 = vsel %vm847_vm7, %v855_v46, %v858_v47  ;;  %v862_v3 = vor.u32 %v861_v63, %v860_v62  ;;  %vm1232_vm12 = vsmask.f32 2304 }
  0x45   : > { %3362 = vmatmul.msk.bf16.gmra.mxu2 %vm551_vm1, %v648_v49  ;;  %v791_v49 = vrot.slane %v4713_v52, 2  ;;  %vm1233_vm13 = vmand %vm1231_vm11, %vm1232_vm12  ;;  %vm1189_vm14 = vcmask 521216   ;;  %vm1249_vm15 = vcmask 519169   ;;  %vm1250_vm2 = vsmask.f32 7942 }
  0x46   : > { %v1017_v55 = vrot.slane %v1015_v48, 3  ;;  %vm1255_vm3 = vcmask 516096   ;;  %vm1256_vm4 = vsmask.f32 256 }
  0x47   : > { %v792_v19 = vsel %vm785_vm6, %v789_v25, %v791_v49  ;;  %vm1257_vm6 = vmand %vm1255_vm3, %vm1256_vm4 }
  0x48   : > { %v1021_v60 = vor.u32 %v1020_v56, %v1017_v55 }
  0x49   : > { %3367 = vmatmul.msk.bf16.gmra.mxu3 %vm551_vm1, %v721_v53  ;;  %v1026_v53 = vshll.u32 %v4777_v45, 16 }
  0x4b   : > { %v1028_v58 = vrot.slane %v1026_v53, 4 }
  0x4d   : > { %3358 = vmatmul.msk.bf16.gmra.mxu1 %vm551_vm1, %v4689_v34  ;;  %v1029_v61 = vor.u32 %v1028_v58, %v1025_v57  ;;  %v4216_v34 = vunpack.c.l.b16 %v4777_v45  ;;  %v4230_v45 = vld [vmem:[%s4643_s14 + $0xc] sm:$0xff]  }
  0x4f   : > { %v1030_v0 = vsel %vm1013_vm8, %v1021_v60, %v1029_v61 }
  0x54   : > { %3354 = vmatmul.msk.bf16.gmra.mxu0 %vm551_vm1, %v547_v8  ;;  %v863_v8 = vsel %vm847_vm7, %v858_v47, %v862_v3 }
  0x55   : > { %3363 = vmatmul.msk.bf16.gmra.mxu2 %vm551_vm1, %v650_v9  ;;  %v846_v9 = vpack.c.b16 %v845_v4, %v845_v4 }
  0x57   : > { %v865_v14 = vshrl.u32 %v846_v9, 16  ;;  %v933_v29 = vrot.slane %v846_v9, 3 }
  0x59   : > { %3368 = vmatmul.msk.bf16.gmra.mxu3 %vm551_vm1, %v730_v18  ;;  %v4805_v18 = vunpack.c.l.b16 %v990_v37  ;;  %v867_v20 = vrot.slane %v865_v14, 2 }
  0x5b   : > { %v1012_v23 = vpack.c.b16 %v4805_v18, %v1007_v17 }
  0x5d   : > { %3359 = vmatmul.msk.bf16.gmra.mxu1 %vm551_vm1, %v597_v28  ;;  %v1041_v25 = vshrl.u32 %v1012_v23, 16  ;;  %v1044_v27 = vshll.u32 %v1012_v23, 16 }
  0x5f   : > { %v1043_v30 = vrot.slane %v1041_v25, 3 }
  0x64   : > { %3355 = vmatmul.msk.bf16.gmra.mxu0 %vm551_vm1, %v550_v32  ;;  %v1046_v32 = vrot.slane %v1044_v27, 4 }
  0x65   : > { %3364 = vmatmul.msk.bf16.gmra.mxu2 %vm551_vm1, %v649_v2  ;;  %v4796_v2 = vld [vmem:[%s4643_s14 + $0x10] sm:$0xff]  }
  0x66   : > { %v1032_v5 = vshrl.u32 %v4796_v2, 16  ;;  %v1035_v6 = vshll.u32 %v4796_v2, 16  ;;  %v1047_v33 = vor.u32 %v1046_v32, %v1043_v30 }
  0x68   : > { %v1037_v38 = vrot.slane %v1035_v6, 4 }
  0x69   : > { %3369 = vmatmul.msk.bf16.gmra.mxu3 %vm551_vm1, %v729_v11  ;;  %v1034_v11 = vrot.slane %v1032_v5, 3 }
  0x6b   : > { %v1038_v16 = vor.u32 %v1037_v38, %v1034_v11 }
  0x6d   : > { %3376 = vmatmul.msk.bf16.vlgmr.msrb.gmra.mxu1 %vm551_vm1, %v859_v54  ;;  %v1039_v22 = vsel %vm1013_vm8, %v1029_v61, %v1038_v16  ;;  %v1048_v35 = vsel %vm1013_vm8, %v1038_v16, %v1047_v33  ;;  %v4221_v54 = vunpack.c.h.b16 %v4796_v2 }
  0x6f   : > { %v1101_v58 = vpack.c.b16 %v1007_v17, %v4221_v54 }
  0x74   : > { %3371 = vmatmul.msk.bf16.vlgmr.msrb.gmra.mxu0 %vm551_vm1, %v788_v59 }
  0x75   : > { %3381 = vmatmul.msk.bf16.vlgmr.msrb.gmra.mxu2 %vm551_vm1, %v930_v15  ;;  %v868_v15 = vshll.u32 %v846_v9, 16 }
  0x77   : > { %v870_v21 = vrot.slane %v868_v15, 3 }
  0x79   : > { %3386 = vmatmul.msk.bf16.vlgmr.msrb.gmra.mxu3 %vm551_vm1, %v1030_v0  ;;  %v871_v24 = vor.u32 %v870_v21, %v867_v20 }
  0x7b   : > { %v872_v28 = vsel %vm847_vm7, %v862_v3, %v871_v24  ;;  %vm4960_vm7 = vmand %vm564_vm0, %vm1232_vm12  ;;  %vm1753_vm0 = vcmask 1043457  }
  0x7c   : > { %vm4976_vm8 = vmand %vm1753_vm0, %vm1250_vm2 }
  0x7d   : > { %3377 = vmatmul.msk.bf16.gmra.mxu1 %vm551_vm1, %v863_v8 }
  0x84   : > { %3372 = vmatmul.msk.bf16.gmra.mxu0 %vm551_vm1, %v4756_v26  ;;  %v934_v26 = vsel %vm927_vm5, %v931_v39, %v933_v29  ;;  %v1099_v39 = vpack.c.b16 %v4216_v34, %v1002_v7  ;;  %vm1251_vm5 = vmand %vm1249_vm15, %vm1250_vm2 }
  0x85   : > { %3382 = vmatmul.msk.bf16.gmra.mxu2 %vm551_vm1, %v932_v10 }
  0x89   : > { %3387 = vmatmul.msk.bf16.gmra.mxu3 %vm551_vm1, %v1039_v22 }
  0x8d   : > { %3378 = vmatmul.msk.bf16.gmra.mxu1 %vm551_vm1, %v872_v28 }
  0x94   : > { %3373 = vmatmul.msk.bf16.gmra.mxu0 %vm551_vm1, %v792_v19 }
  0x95   : > { %3383 = vmatmul.msk.bf16.gmra.mxu2 %vm551_vm1, %v934_v26 }
  0x99   : > { %3388 = vmatmul.msk.bf16.gmra.mxu3 %vm551_vm1, %v1048_v35 }
  0x9d   : > { %3379 = vmatmul.msk.bf16.gmra.mxu1 %vm551_vm1, %v871_v24 }
  0xa4   : > { %3374 = vmatmul.msk.bf16.gmra.mxu0 %vm551_vm1, %v791_v49 }
  0xa5   : > { %3384 = vmatmul.msk.bf16.gmra.mxu2 %vm551_vm1, %v933_v29 }
  0xa9   : > { %3389 = vmatmul.msk.bf16.gmra.mxu3 %vm551_vm1, %v1047_v33 }
  0xaa   : > { %v619_v36 = vpop.f32.mrf.mxu1 }
  0xb1   : > { %v577_v40 = vpop.f32.mrf.mxu0 }
  0xb2   : > { %v620_v10 = vadd.f32 %v619_v36, %v577_v40  ;;  %v4832_v41 = vpop.f32.mrf.mxu1 }
  0xb4   : > { %3391 = vmatmul.msk.bf16.vlgmr.msra.gmra.mxu0 %vm551_vm1, %v1099_v39 }
  0xb8   : > { %v675_v52 = vpop.f32.mrf.mxu2 }
  0xb9   : > { %v693_v42 = vadd.f32 %v675_v52, %v620_v10  ;;  %v4834_v43 = vpop.f32.mrf.mxu0  ;;  %v4480_v10 = vmov -inf  }
  0xba   : > { %v624_v47 = vpop.f32.mrf.mxu1  ;;  %1178 = vst.msk [vmem:[#allocation2] sm:$0xff] %vm1177_vm9, %v4480_v10 }
  0xbb   : > { %1179 = vst.msk [vmem:[#allocation2 + $0x8] sm:$0xff] %vm1177_vm9, %v4480_v10 }
  0xbc   : > { %v755_v44 = vpop.f32.mrf.mxu3  ;;  %1180 = vst.msk [vmem:[#allocation2 + $0x10] sm:$0xff] %vm1177_vm9, %v4480_v10 }
  0xbd   : > { %v4836_v46 = vadd.f32 %v755_v44, %v693_v42  ;;  %1181 = vst.msk [vmem:[#allocation2 + $0x18] sm:$0xff] %vm1177_vm9, %v4480_v10 }
  0xbe   : > { %1182 = vst.msk [vmem:[#allocation2 + $0x20] sm:$0xff] %vm1177_vm9, %v4480_v10 }
  0xbf   : > { %1183 = vst.msk [vmem:[#allocation2 + $0x28] sm:$0xff] %vm1177_vm9, %v4480_v10 }
  0xc0   : > { %v4838_v48 = vpop.f32.mrf.mxu2  ;;  %3211 = vst [vmem:[#allocation6] sm:$0xff] %v4480_v10 }
  0xc1   : > { %v582_v49 = vpop.f32.mrf.mxu0 }
  0xc2   : > { %v625_v31 = vadd.f32 %v624_v47, %v582_v49  ;;  %v4844_v50 = vpop.f32.mrf.mxu1 }
  0xc4   : > { %v4841_v7 = vpop.f32.mrf.mxu3  ;;  %3392 = vmatmul.msk.bf16.gmra.mxu0 %vm551_vm1, %v4230_v45 }
  0xc8   : > { %v680_v51 = vpop.f32.mrf.mxu2 }
  0xc9   : > { %v695_v53 = vadd.f32 %v680_v51, %v625_v31  ;;  %v4846_v19 = vpop.f32.mrf.mxu0 }
  0xca   : > { %v629_v56 = vpop.f32.mrf.mxu1 }
  0xcc   : > { %v760_v13 = vpop.f32.mrf.mxu3 }
  0xcd   : > { %v4849_v55 = vadd.f32 %v760_v13, %v695_v53  ;;  %v622_v13 = vadd.f32 %v4832_v41, %v4834_v43  ;;  %v4907_v41 = vld [vmem:[%s5042_s3] ss:$0 sm:$0xff]  ;;  %v4053_v43 = vld [vmem:[#allocation7 + $0x18] sm:$0xff] }
  0xce   : > { %1361 = vmatpush.bf16.msra.mxu2 %v4053_v43  ;;  %v4481_v43 = vmov 0  }
  0xcf   : > { %v694_v54 = vadd.f32 %v4838_v48, %v622_v13  ;;  %1230 = vst.msk [vmem:[#allocation3] sm:$0xf] %vm1229_vm10, %v4481_v43 }
  0xd0   : > { %v4851_v57 = vpop.f32.mrf.mxu2  ;;  %1735 = vst [vmem:[#allocation4] sm:$0xf] %v4481_v43 }
  0xd1   : > { %v587_v59 = vpop.f32.mrf.mxu0  ;;  %2476 = vst [vmem:[#allocation5] sm:$0xf] %v4481_v43  ;;  %v4081_v43 = vld [vmem:[#allocation7 + $0xf8] sm:$0xff] }
  0xd2   : > { %v630_v60 = vadd.f32 %v629_v56, %v587_v59  ;;  %v4856_v62 = vpop.f32.mrf.mxu1  ;;  %v774_v59 = vadd.f32 %v4841_v7, %v694_v54 }
  0xd4   : > { %v4853_v61 = vpop.f32.mrf.mxu3  ;;  %3393 = vmatmul.msk.bf16.gmra.mxu0 %vm551_vm1, %v1101_v58 }
  0xd8   : > { %v685_v63 = vpop.f32.mrf.mxu2 }
  0xd9   : > { %v697_v0 = vadd.f32 %v685_v63, %v630_v60  ;;  %v4858_v1 = vpop.f32.mrf.mxu0 }
  0xda   : > { %v634_v4 = vpop.f32.mrf.mxu1 }
  0xdc   : > { %v765_v3 = vpop.f32.mrf.mxu3 }
  0xdd   : > { %v4860_v2 = vadd.f32 %v765_v3, %v697_v0  ;;  %v4902_v3 = vld [vmem:[%s5041_s2] ss:$0 sm:$0xff] }
  0xe0   : > { %v4862_v5 = vpop.f32.mrf.mxu2 }
  0xe1   : > { %v592_v6 = vpop.f32.mrf.mxu0 }
  0xe2   : > { %v635_v9 = vpop.f32.mrf.mxu1 }
  0xe4   : > { %v4864_v8 = vpop.f32.mrf.mxu3 }
  0xe8   : > { %v690_v11 = vpop.f32.mrf.mxu2 }
  0xe9   : > { %v593_v38 = vpop.f32.mrf.mxu0 }
  0xea   : > { %v897_v37 = vpop.f32.mrf.mxu1 }
  0xec   : > { %v770_v12 = vpop.f32.mrf.mxu3 }
  0xf0   : > { %v691_v14 = vpop.f32.mrf.mxu2 }
  0xf1   : > { %v817_v15 = vpop.f32.mrf.mxu0 }
  0xf2   : > { %v899_v17 = vpop.f32.mrf.mxu1  ;;  %v835_v31 = vadd.f32 %v817_v15, %v4836_v46 }
  0xf4   : > { %v771_v16 = vpop.f32.mrf.mxu3  ;;  %v915_v56 = vadd.f32 %v897_v37, %v835_v31 }
  0xf5   : > { %v627_v16 = vadd.f32 %v4844_v50, %v4846_v19 }
  0xf8   : > { %v959_v20 = vpop.f32.mrf.mxu2 }
  0xf9   : > { %v819_v21 = vpop.f32.mrf.mxu0  ;;  %v977_v60 = vadd.f32 %v959_v20, %v915_v56 }
  0xfa   : > { %v902_v23 = vpop.f32.mrf.mxu1  ;;  %v836_v63 = vadd.f32 %v819_v21, %v774_v59  ;;  %v4057_v21 = vld [vmem:[#allocation7 + $0x38] sm:$0xff] }
  0xfb   : > { %1321 = vmatpush.bf16.msra.mxu1 %v4057_v21 }
  0xfc   : > { %v1073_v22 = vpop.f32.mrf.mxu3  ;;  %v916_v48 = vadd.f32 %v899_v17, %v836_v63  ;;  %v696_v17 = vadd.f32 %v4851_v57, %v627_v16  ;;  %v4061_v63 = vld [vmem:[#allocation7 + $0x58] sm:$0xff] }
  0xfd   : > { %v1091_v0 = vadd.f32 %v1073_v22, %v977_v60  ;;  %1415 = vmatpush.bf16.msra.mxu3 %v4061_v63 }
 0x100   : > { %v961_v24 = vpop.f32.mrf.mxu2 }
 0x101   : > { %v822_v25 = vpop.f32.mrf.mxu0  ;;  %v978_v11 = vadd.f32 %v961_v24, %v916_v48  ;;  %v776_v24 = vadd.f32 %v4853_v61, %v696_v17  ;;  %v4059_v48 = vld [vmem:[#allocation7 + $0x48] sm:$0xff] }
 0x102   : > { %v4866_v28 = vpop.f32.mrf.mxu1  ;;  %v837_v12 = vadd.f32 %v822_v25, %v4849_v55 }
 0x104   : > { %v1075_v27 = vpop.f32.mrf.mxu3  ;;  %v917_v22 = vadd.f32 %v902_v23, %v837_v12 }
 0x105   : > { %v1092_v37 = vadd.f32 %v1075_v27, %v978_v11  ;;  %v1234_v11 = vld [vmem:[#allocation3 + $0x4] sm:$0x7] }
 0x108   : > { %v964_v29 = vpop.f32.mrf.mxu2 }
 0x109   : > { %v824_v30 = vpop.f32.mrf.mxu0 }
 0x10a   : > { %v4868_v26 = vpop.f32.mrf.mxu1  ;;  %v838_v25 = vadd.f32 %v824_v30, %v776_v24 }
 0x10c   : > { %v1078_v32 = vpop.f32.mrf.mxu3  ;;  %v918_v19 = vadd.f32 %v4866_v28, %v838_v25 }
 0x110   : > { %v4870_v33 = vpop.f32.mrf.mxu2 }
 0x111   : > { %v4872_v35 = vpop.f32.mrf.mxu0  ;;  %v980_v23 = vadd.f32 %v4870_v33, %v918_v19 }
 0x112   : > { %v4876_v36 = vpop.f32.mrf.mxu1  ;;  %v839_v61 = vadd.f32 %v4872_v35, %v4860_v2 }
 0x114   : > { %v4874_v34 = vpop.f32.mrf.mxu3  ;;  %v919_v13 = vadd.f32 %v4868_v26, %v839_v61 }
 0x118   : > { %v4878_v39 = vpop.f32.mrf.mxu2 }
 0x119   : > { %v4880_v40 = vpop.f32.mrf.mxu0  ;;  %v981_v2 = vadd.f32 %v4878_v39, %v919_v13 }
 0x11a   : > { %v912_v42 = vpop.f32.mrf.mxu1 }
 0x11b   : > { %v979_v42 = vadd.f32 %v964_v29, %v917_v22  ;;  %v1094_v29 = vadd.f32 %v4874_v34, %v980_v23 }
 0x11c   : > { %v4885_v52 = vpop.f32.mrf.mxu3 }
 0x11d   : > { %v1093_v27 = vadd.f32 %v1078_v32, %v979_v42  ;;  %v1095_v56 = vadd.f32 %v4885_v52, %v981_v2  ;;  %v4065_v2 = vld [vmem:[#allocation7 + $0x78] sm:$0xff] }
 0x120   : > { %v4890_v44 = vpop.f32.mrf.mxu2 }
 0x121   : > { %v832_v47 = vpop.f32.mrf.mxu0 }
 0x122   : > { %v913_v49 = vpop.f32.mrf.mxu1 }
 0x124   : > { %v4892_v45 = vpop.f32.mrf.mxu3 }
 0x128   : > { %v974_v51 = vpop.f32.mrf.mxu2 }
 0x129   : > { %v833_v53 = vpop.f32.mrf.mxu0  ;;  %v632_v51 = vadd.f32 %v4856_v62, %v4858_v1 }
 0x12b   : > { %v698_v28 = vadd.f32 %v4862_v5, %v632_v51 }
 0x12c   : > { %v1088_v58 = vpop.f32.mrf.mxu3 }
 0x12d   : > { %v778_v54 = vadd.f32 %v4864_v8, %v698_v28 }
 0x12f   : > { %v840_v34 = vadd.f32 %v4880_v40, %v778_v54  ;;  %v4052_v40 = vld [vmem:[#allocation7 + $0x10] sm:$0xff] }
 0x130   : > { %v975_v46 = vpop.f32.mrf.mxu2  ;;  %1362 = vmatpush.bf16.msra.mxu2 %v4052_v40 }
 0x131   : > { %v1127_v4 = vpop.f32.mrf.mxu0  ;;  %v920_v5 = vadd.f32 %v4876_v36, %v840_v34  ;;  %v4051_v36 = vld [vmem:[#allocation7 + $0x8] sm:$0xff] }
 0x132   : > { %v1145_v6 = vadd.f32 %v1127_v4, %v1091_v0  ;;  %v4056_v0 = vld [vmem:[#allocation7 + $0x30] sm:$0xff] }
 0x133   : > { %v982_v59 = vadd.f32 %v4890_v44, %v920_v5  ;;  %v4060_v4 = vld [vmem:[#allocation7 + $0x50] sm:$0xff]  ;;  %1322 = vmatpush.bf16.msra.mxu1 %v4056_v0  ;;  %v4066_v5 = vld [vmem:[#allocation7 + $0x80] sm:$0xff] }
 0x134   : > { %v1155_v7 = vmul.f32 %v4902_v3, %v1145_v6  ;;  %v1089_v9 = vpop.f32.mrf.mxu3  ;;  %v4055_v6 = vld [vmem:[#allocation7 + $0x28] sm:$0xff]  ;;  %1416 = vmatpush.bf16.msra.mxu3 %v4060_v4  ;;  %1363 = vmatpush.bf16.msra.mxu2 %v4051_v36  ;;  %v1252_v0 = vld [vmem:[#allocation3] sm:$0xe] }
 0x135   : > { %v1096_v39 = vadd.f32 %v4892_v45, %v982_v59  ;;  %v4054_v9 = vld [vmem:[#allocation7 + $0x20] sm:$0xff]  ;;  %v4063_v59 = vld [vmem:[#allocation7 + $0x68] sm:$0xff] }
 0x136   : > { %v1165_v38 = vadd.f32 %v4907_v41, %v1155_v7  ;;  %v4050_v7 = vld [vmem:[#allocation7] sm:$0xff] }
 0x137   : > { %1323 = vmatpush.bf16.msra.mxu1 %v4055_v6 }
 0x138   : > { %v1171_v14 = vmax.f32 %v1165_v38, 0.0  ;;  %v1235_v38 = vsel %vm1233_vm13, 0, %v1234_v11  ;;  %1417 = vmatpush.bf16.msra.mxu3 %v4059_v48  ;;  %1364 = vmatpush.bf16.msra.mxu2 %v4050_v7 }
 0x139   : > { %v1129_v15 = vpop.f32.mrf.mxu0  ;;  %1236 = vst [vmem:[#allocation3 + $0x4] sm:$0x7] %v1235_v38  ;;  %v4080_v38 = vld [vmem:[#allocation7 + $0xf0] sm:$0xff] }
 0x13a   : > { %1184 = vst.msk [vmem:[#allocation2 + $0x2] sm:$0xff] %vm1177_vm9, %v1171_v14  ;;  %v1146_v20 = vadd.f32 %v1129_v15, %v1092_v37 }
 0x13b   : > { %1324 = vmatpush.bf16.msra.mxu1 %v4054_v9 }
 0x13c   : > { %v1156_v10 = vmul.f32 %v4902_v3, %v1146_v20 }
 0x13e   : > { %v1166_v55 = vadd.f32 %v4907_v41, %v1156_v10 }
 0x13f   : > { %1480 = vmatpush.bf16.msrb.mxu1 %v4065_v2 }
 0x140   : > { %v1172_v47 = vmax.f32 %v1166_v55, 0.0 }
 0x141   : > { %v1132_v49 = vpop.f32.mrf.mxu0 }
 0x142   : > { %1185 = vst.msk [vmem:[#allocation2 + $0xa] sm:$0xff] %vm1177_vm9, %v1172_v47  ;;  %v1147_v50 = vadd.f32 %v1132_v49, %v1093_v27  ;;  %v4069_v27 = vld [vmem:[#allocation7 + $0x98] sm:$0xff]  ;;  %v4058_v47 = vld [vmem:[#allocation7 + $0x40] sm:$0xff] }
 0x143   : > { %1535 = vmatpush.bf16.msrb.mxu2 %v4069_v27  ;;  %1418 = vmatpush.bf16.msra.mxu3 %v4058_v47 }
 0x144   : > { %v1157_v57 = vmul.f32 %v4902_v3, %v1147_v50 }
 0x146   : > { %v1167_v31 = vadd.f32 %v4907_v41, %v1157_v57 }
 0x148   : > { %v1173_v30 = vmax.f32 %v1167_v31, 0.0  ;;  %v4068_v31 = vld [vmem:[#allocation7 + $0x90] sm:$0xff] }
 0x149   : > { %v1134_v32 = vpop.f32.mrf.mxu0  ;;  %1536 = vmatpush.bf16.msrb.mxu2 %v4068_v31 }
 0x14a   : > { %1186 = vst.msk [vmem:[#allocation2 + $0x12] sm:$0xff] %vm1177_vm9, %v1173_v30  ;;  %v1148_v53 = vadd.f32 %v1134_v32, %v1094_v29  ;;  %v4073_v29 = vld [vmem:[#allocation7 + $0xb8] sm:$0xff] }
 0x14b   : > { %1597 = vmatpush.bf16.msrb.mxu3 %v4073_v29 }
 0x14c   : > { %v1158_v33 = vmul.f32 %v4902_v3, %v1148_v53 }
 0x14e   : > { %v1168_v35 = vadd.f32 %v4907_v41, %v1158_v33  ;;  %v4067_v33 = vld [vmem:[#allocation7 + $0x88] sm:$0xff] }
 0x14f   : > { %1537 = vmatpush.bf16.msrb.mxu2 %v4067_v33 }
 0x150   : > { %v1174_v62 = vmax.f32 %v1168_v35, 0.0  ;;  %v4072_v35 = vld [vmem:[#allocation7 + $0xb0] sm:$0xff] }
 0x151   : > { %v1137_v1 = vpop.f32.mrf.mxu0  ;;  %v1195_v14 = vld [vmem:[#allocation2 + $0x1] ss:$8 sm:$0xf]  ;;  %1598 = vmatpush.bf16.msrb.mxu3 %v4072_v35 }
 0x152   : > { %1187 = vst.msk [vmem:[#allocation2 + $0x1a] sm:$0xff] %vm1177_vm9, %v1174_v62  ;;  %v1149_v58 = vadd.f32 %v1137_v1, %v1095_v56  ;;  %v4064_v62 = vld [vmem:[#allocation7 + $0x70] sm:$0xff]  ;;  %v4071_v1 = vld [vmem:[#allocation7 + $0xa8] sm:$0xff]  ;;  %v4074_v35 = vld [vmem:[#allocation7 + $0xc0] sm:$0xff] }
 0x153   : > { %1481 = vmatpush.bf16.msrb.mxu1 %v4064_v62  ;;  %1538 = vmatpush.bf16.msrb.mxu2 %v4066_v5 }
 0x154   : > { %v1159_v26 = vmul.f32 %v4902_v3, %v1149_v58 }
 0x155   : > { %1599 = vmatpush.bf16.msrb.mxu3 %v4071_v1 }
 0x156   : > { %v1169_v8 = vadd.f32 %v4907_v41, %v1159_v26 }
 0x157   : > { %1482 = vmatpush.bf16.msrb.mxu1 %v4063_v59 }
 0x158   : > { %v1175_v60 = vmax.f32 %v1169_v8, 0.0  ;;  %v4070_v8 = vld [vmem:[#allocation7 + $0xa0] sm:$0xff] }
 0x159   : > { %v1139_v52 = vpop.f32.mrf.mxu0  ;;  %v1200_v20 = vld [vmem:[#allocation2 + $0x2] ss:$8 sm:$0xf]  ;;  %v1205_v24 = vld [vmem:[#allocation2 + $0x3] ss:$8 sm:$0xf]  ;;  %1600 = vmatpush.bf16.msrb.mxu3 %v4070_v8 }
 0x15a   : > { %1188 = vst.msk [vmem:[#allocation2 + $0x22] sm:$0xff] %vm1177_vm9, %v1175_v60  ;;  %v1150_v46 = vadd.f32 %v1139_v52, %v1096_v39  ;;  %v1210_v49 = vld [vmem:[#allocation2 + $0x4] ss:$8 sm:$0xf] }
 0x15b   : > { %v1215_v23 = vld [vmem:[#allocation2 + $0x5] ss:$8 sm:$0xf]  ;;  %v1220_v51 = vld [vmem:[#allocation2 + $0x6] ss:$8 sm:$0xf] }
 0x15c   : > { %v1160_v44 = vmul.f32 %v4902_v3, %v1150_v46  ;;  %v1225_v54 = vld [vmem:[#allocation2 + $0x7] ss:$8 sm:$0xf]  ;;  %v1258_v52 = vld [vmem:[#allocation3 + $0x4] sm:$0x1] }
 0x15d   : > { %v4062_v46 = vld [vmem:[#allocation7 + $0x60] sm:$0xff] }
 0x15e   : > { %v1170_v45 = vadd.f32 %v4907_v41, %v1160_v44  ;;  %v1191_v41 = vld [vmem:[#allocation2] ss:$8 sm:$0xf]  ;;  %1483 = vmatpush.bf16.msrb.mxu1 %v4062_v46 }
 0x15f   : > { %v4097_v46 = vld [vmem:[#allocation10 + $0x78] sm:$0xff] }
 0x160   : > { %v1176_v3 = vmax.f32 %v1170_v45, 0.0 }
 0x161   : > { %v1192_v12 = vld [vmem:[#allocation2] ss:$8 sm:$0x30]  ;;  %v1196_v37 = vld [vmem:[#allocation2 + $0x1] ss:$8 sm:$0x30] }
 0x162   : > { %1190 = vst.msk [vmem:[#allocation2 + $0x2a] sm:$0x3f] %vm1189_vm14, %v1176_v3  ;;  %v1193_v15 = vor.u32 %v1192_v12, %v1191_v41  ;;  %v1197_v16 = vor.u32 %v1196_v37, %v1195_v14 }
 0x164   : > { %v1198_v22 = vmax.f32 %v1193_v15, %v1197_v16 }
 0x169   : > { %v1201_v21 = vld [vmem:[#allocation2 + $0x2] ss:$8 sm:$0x30]  ;;  %v1206_v17 = vld [vmem:[#allocation2 + $0x3] ss:$8 sm:$0x30] }
 0x16a   : > { %v1202_v10 = vor.u32 %v1201_v21, %v1200_v20  ;;  %v1211_v42 = vld [vmem:[#allocation2 + $0x4] ss:$8 sm:$0x30]  ;;  %v1207_v25 = vor.u32 %v1206_v17, %v1205_v24  ;;  %v1216_v50 = vld [vmem:[#allocation2 + $0x5] ss:$8 sm:$0x30] }
 0x16b   : > { %v1212_v57 = vor.u32 %v1211_v42, %v1210_v49  ;;  %v1221_v61 = vld [vmem:[#allocation2 + $0x6] ss:$8 sm:$0x30]  ;;  %v1217_v32 = vor.u32 %v1216_v50, %v1215_v23  ;;  %v1226_v53 = vld [vmem:[#allocation2 + $0x7] ss:$8 sm:$0x30] }
 0x16c   : > { %v1203_v55 = vmax.f32 %v1198_v22, %v1202_v10  ;;  %v1222_v13 = vor.u32 %v1221_v61, %v1220_v51  ;;  %v1227_v56 = vor.u32 %v1226_v53, %v1225_v54  ;;  %v4079_v17 = vld [vmem:[#allocation7 + $0xe8] sm:$0xff]  ;;  %v4078_v49 = vld [vmem:[#allocation7 + $0xe0] sm:$0xff] }
 0x16d   : > { %v4075_v53 = vld [vmem:[#allocation7 + $0xc8] sm:$0xff] }
 0x16e   : > { %v1208_v19 = vmax.f32 %v1203_v55, %v1207_v25  ;;  %v4077_v55 = vld [vmem:[#allocation7 + $0xd8] sm:$0xff] }
 0x170   : > { %v1213_v30 = vmax.f32 %v1208_v19, %v1212_v57  ;;  %v4076_v19 = vld [vmem:[#allocation7 + $0xd0] sm:$0xff] }
 0x172   : > { %v1218_v28 = vmax.f32 %v1213_v30, %v1217_v32 }
 0x174   : > { %v1223_v34 = vmax.f32 %v1218_v28, %v1222_v13 }
 0x176   : > { %v1228_v58 = vmax.f32 %v1223_v34, %v1227_v56 }
 0x178   : > { %v1237_v26 = vpack.c.bf16 %v1228_v58, %v1228_v58 }
 0x17a   : > { %v1239_v39 = vshrl.u32 %v1237_v26, 16  ;;  %v1242_v60 = vshll.u32 %v1237_v26, 16 }
 0x17c   : > { %v1241_v63 = vrot.slane %v1239_v39, 6  ;;  %v1244_v40 = vrot.slane %v1242_v60, 7 }
 0x17e   : > { %v1245_v4 = vor.u32 %v1244_v40, %v1241_v63  ;;  %v1246_v36 = vrot.slane %v1241_v63, 4  ;;  %v4089_v63 = vld [vmem:[#allocation10 + $0x38] sm:$0xff]  ;;  %v4088_v40 = vld [vmem:[#allocation10 + $0x30] sm:$0xff] }
 0x17f   : > { %1918 = vmatpush.bf16.msrb.mxu0 %v4089_v63  ;;  %v4125_v63 = vld [vmem:[#allocation10 + $0x158] sm:$0xff] }
 0x180   : > { %v1253_v44 = vsel %vm1251_vm5, %v1245_v4, %v1252_v0  ;;  %v1259_v6 = vsel %vm1257_vm6, %v1246_v36, %v1258_v52  ;;  %v4105_v0 = vld [vmem:[#allocation10 + $0xb8] sm:$0xff]  ;;  %v4087_v52 = vld [vmem:[#allocation10 + $0x28] sm:$0xff]  ;;  %v4104_v4 = vld [vmem:[#allocation10 + $0xb0] sm:$0xff] }
 0x181   : > { %1254 = vst [vmem:[#allocation3] sm:$0xe] %v1253_v44  ;;  %v4113_v36 = vld [vmem:[#allocation10 + $0xf8] sm:$0xff] }
 0x182   : > { %1260 = vst [vmem:[#allocation3 + $0x4] sm:$0x1] %v1259_v6  ;;  %v4086_v6 = vld [vmem:[#allocation10 + $0x20] sm:$0xff] }
 0x183   : > { %1919 = vmatpush.bf16.msrb.mxu0 %v4088_v40 }
 0x187   : > { %1920 = vmatpush.bf16.msrb.mxu0 %v4087_v52 }
 0x188   : > { %v1261_v45 = vld [vmem:[#allocation3] sm:$0x7]  ;;  %v1607_v57 = vld [vmem:[#allocation3] sm:$0x8] }
 0x189   : > { %v1370_v48 = vld [vmem:[#allocation3] sm:$0xe]  ;;  %3428 = vmatmul.msk.bf16.vlgmr.msra.gmra.mxu2 %vm1177_vm9, %v1261_v45  ;;  %v1545_v12 = vld [vmem:[#allocation3 + $0x4] sm:$0x3]  ;;  %v1618_v32 = vunpack.c.l.b16 %v1607_v57  ;;  %v4103_v45 = vld [vmem:[#allocation10 + $0xa8] sm:$0xff] }
 0x18a   : > { %v1270_v7 = vld [vmem:[#allocation3] sm:$0xf]  ;;  %v1381_v9 = vunpack.c.l.b16 %v1370_v48  ;;  %1714 = vmatpush.bf16.msra.mxu2 %v4081_v43  ;;  %v1426_v14 = vld [vmem:[#allocation3 + $0x4] sm:$0x1]  ;;  %v1556_v21 = vunpack.c.l.b16 %v1545_v12  ;;  %v4096_v43 = vld [vmem:[#allocation10 + $0x70] sm:$0xff] }
 0x18b   : > { %v1281_v11 = vunpack.c.l.b16 %v1270_v7  ;;  %v1490_v3 = vld [vmem:[#allocation3] sm:$0xc]  ;;  %v1439_v42 = vunpack.c.l.b16 %v1426_v14  ;;  %v1662_v23 = vld [vmem:[#allocation3 + $0x4] sm:$0x7]  ;;  %v4112_v48 = vld [vmem:[#allocation10 + $0xf0] sm:$0xff]  ;;  %1921 = vmatpush.bf16.msrb.mxu0 %v4086_v6 }
 0x18c   : > { %v1382_v37 = vpack.c.b16 %v1381_v9, %v1381_v9  ;;  %v1501_v20 = vunpack.c.l.b16 %v1490_v3  ;;  %v1425_v22 = vld [vmem:[#allocation3] sm:$0xe]  ;;  %v1673_v51 = vunpack.c.l.b16 %v1662_v23  ;;  %v1619_v39 = vpack.c.b16 %v1556_v21, %v1618_v32  ;;  %v4092_v57 = vld [vmem:[#allocation10 + $0x50] sm:$0xff]  ;;  %v4099_v23 = vld [vmem:[#allocation10 + $0x88] sm:$0xff] }
 0x18d   : > { %v1282_v41 = vpack.c.b16 %v1281_v11, %v1281_v11  ;;  %v1438_v47 = vunpack.c.l.b16 %v1425_v22  ;;  %v4085_v11 = vld [vmem:[#allocation10 + $0x18] sm:$0xff]  ;;  %v4102_v12 = vld [vmem:[#allocation10 + $0xa0] sm:$0xff]  ;;  %v4124_v6 = vld [vmem:[#allocation10 + $0x150] sm:$0xff] }
 0x18e   : > { %v1383_v15 = vrot.slane %v1382_v37, 1  ;;  %1715 = vmatpush.bf16.msra.mxu2 %v4080_v38  ;;  %v1557_v27 = vpack.c.b16 %v1556_v21, %v1501_v20  ;;  %v1502_v50 = vpack.c.b16 %v1439_v42, %v1501_v20  ;;  %v1674_v2 = vpack.c.b16 %v1673_v51, %v1618_v32  ;;  %v4095_v38 = vld [vmem:[#allocation10 + $0x68] sm:$0xff]  ;;  %v4110_v20 = vld [vmem:[#allocation10 + $0xe0] sm:$0xff]  ;;  %v4156_v21 = vld [vmem:[#allocation12 + $0x50] sm:$0xff] }
 0x18f   : > { %v1286_v16 = vshll.u32 %v1282_v41, 16  ;;  %v1284_v10 = vshrl.u32 %v1282_v41, 16  ;;  %v1440_v29 = vpack.c.b16 %v1439_v42, %v1438_v47  ;;  %v1620_v60 = vrot.slane %v1619_v39, 3  ;;  %1922 = vmatpush.bf16.msrb.mxu0 %v4085_v11  ;;  %v4111_v37 = vld [vmem:[#allocation10 + $0xe8] sm:$0xff]  ;;  %v4084_v41 = vld [vmem:[#allocation10 + $0x10] sm:$0xff]  ;;  %v4142_v11 = vld [vmem:[#allocation10 + $0x1e0] sm:$0xff] }
 0x190   : > { %3445 = vmatmul.msk.bf16.vlgmr.msra.gmra.mxu3 %vm1177_vm9, %v1383_v15  ;;  %v1559_v31 = vshrl.u32 %v1557_v27, 16  ;;  %v1562_v61 = vshll.u32 %v1557_v27, 16  ;;  %v1503_v30 = vrot.slane %v1502_v50, 2  ;;  %v1676_v1 = vshrl.u32 %v1674_v2, 16  ;;  %v4094_v15 = vld [vmem:[#allocation10 + $0x60] sm:$0xff]  ;;  %v4109_v27 = vld [vmem:[#allocation10 + $0xd8] sm:$0xff] }
 0x191   : > { %v1288_v24 = vrot.slane %v1286_v16, 1  ;;  %v1442_v33 = vshrl.u32 %v1440_v29, 16  ;;  %v1445_v54 = vshll.u32 %v1440_v29, 16  ;;  %v1679_v58 = vshll.u32 %v1674_v2, 16  ;;  %1857 = vmatpush.bf16.msra.mxu3 %v4097_v46  ;;  %v4101_v16 = vld [vmem:[#allocation10 + $0x98] sm:$0xff]  ;;  %v4091_v51 = vld [vmem:[#allocation10 + $0x48] sm:$0xff] }
 0x192   : > { %1716 = vmatpush.bf16.msra.mxu2 %v4079_v17  ;;  %v1561_v28 = vrot.slane %v1559_v31, 2  ;;  %v1564_v13 = vrot.slane %v1562_v61, 3  ;;  %v1678_v26 = vrot.slane %v1676_v1, 3  ;;  %v1738_v17 = vld [vmem:[#allocation4 + $0x4] sm:$0x7]  ;;  %v1102_v47 = vpack.c.b16 %v4805_v18, %v4805_v18  ;;  %v4129_v50 = vld [vmem:[#allocation10 + $0x178] sm:$0xff] }
 0x193   : > { %v1289_v25 = vor.u32 %v1288_v24, %v1284_v10  ;;  %v1444_v56 = vrot.slane %v1442_v33, 1  ;;  %v1447_v62 = vrot.slane %v1445_v54, 2  ;;  %v1681_v59 = vrot.slane %v1679_v58, 4  ;;  %1923 = vmatpush.bf16.msrb.mxu0 %v4084_v41  ;;  %v4083_v24 = vld [vmem:[#allocation10 + $0x8] sm:$0xff]  ;;  %v4108_v31 = vld [vmem:[#allocation10 + $0xd0] sm:$0xff]  ;;  %v4098_v18 = vld [vmem:[#allocation10 + $0x80] sm:$0xff] }
 0x194   : > { %v1565_v34 = vor.u32 %v1564_v13, %v1561_v28  ;;  %v1739_v10 = vsel %vm4960_vm7, 0, %v1738_v17  ;;  %3394 = vmatmul.msk.bf16.gmra.mxu0 %vm551_vm1, %v1102_v47  ;;  %v4107_v28 = vld [vmem:[#allocation10 + $0xc8] sm:$0xff]  ;;  %v4137_v13 = vld [vmem:[#allocation10 + $0x1b8] sm:$0xff]  ;;  %v4090_v54 = vld [vmem:[#allocation10 + $0x40] sm:$0xff]  ;;  %vm1758_vm1 = vcmask 1040384  }
 0x195   : > { %3411 = vmatmul.msk.bf16.vlgmr.msra.gmra.mxu1 %vm1177_vm9, %v1289_v25  ;;  %v1448_v5 = vor.u32 %v1447_v62, %v1444_v56  ;;  %v1682_v8 = vor.u32 %v1681_v59, %v1678_v26  ;;  %1858 = vmatpush.bf16.msra.mxu3 %v4096_v43  ;;  %1740 = vst [vmem:[#allocation4 + $0x4] sm:$0x7] %v1739_v10  ;;  %v4100_v25 = vld [vmem:[#allocation10 + $0x90] sm:$0xff]  ;;  %v4127_v33 = vld [vmem:[#allocation10 + $0x168] sm:$0xff]  ;;  %v4145_v1 = vld [vmem:[#allocation10 + $0x1f8] sm:$0xff] }
 0x196   : > { %1652 = vmatpush.bf16.msra.mxu1 %v4077_v55  ;;  %1717 = vmatpush.bf16.msra.mxu2 %v4078_v49  ;;  %v4093_v55 = vld [vmem:[#allocation10 + $0x58] sm:$0xff]  ;;  %v4082_v49 = vld [vmem:[#allocation10] sm:$0xff]  ;;  %v4136_v62 = vld [vmem:[#allocation10 + $0x1b0] sm:$0xff] }
 0x197   : > { %1924 = vmatpush.bf16.msrb.mxu0 %v4083_v24  ;;  %v4120_v59 = vld [vmem:[#allocation10 + $0x130] sm:$0xff]  ;;  %v4135_v39 = vld [vmem:[#allocation10 + $0x1a8] sm:$0xff]  ;;  %v4134_v46 = vld [vmem:[#allocation10 + $0x1a0] sm:$0xff] }
 0x198   : > { %v4131_v10 = vld [vmem:[#allocation10 + $0x188] sm:$0xff]  ;;  %v4140_v24 = vld [vmem:[#allocation10 + $0x1d0] sm:$0xff] }
 0x199   : > { %3479 = vmatmul.msk.bf16.vlgmr.msrb.gmra.mxu2 %vm1177_vm9, %v1503_v30  ;;  %1859 = vmatpush.bf16.msra.mxu3 %v4095_v38  ;;  %v4128_v30 = vld [vmem:[#allocation10 + $0x170] sm:$0xff]  ;;  %v4123_v38 = vld [vmem:[#allocation10 + $0x148] sm:$0xff] }
 0x19a   : > { %1653 = vmatpush.bf16.msra.mxu1 %v4076_v19  ;;  %2097 = vmatpush.bf16.msrb.mxu2 %v4113_v36 }
 0x19b   : > { %1925 = vmatpush.bf16.msrb.mxu0 %v4082_v49 }
 0x19d   : > { %1860 = vmatpush.bf16.msra.mxu3 %v4094_v15  ;;  %v4141_v15 = vld [vmem:[#allocation10 + $0x1d8] sm:$0xff] }
 0x19e   : > { %1654 = vmatpush.bf16.msra.mxu1 %v4075_v53  ;;  %2098 = vmatpush.bf16.msrb.mxu2 %v4112_v48  ;;  %v4118_v48 = vld [vmem:[#allocation10 + $0x120] sm:$0xff] }
 0x19f   : > { %2274 = vmatpush.bf16.msra.mxu0 %v4129_v50  ;;  %v1760_v50 = vld [vmem:[#allocation4 + $0x4] sm:$0x1] }
 0x1a0   : > { %3496 = vmatmul.msk.bf16.vlgmr.msrb.gmra.mxu3 %vm1177_vm9, %v1565_v34  ;;  %v4121_v34 = vld [vmem:[#allocation10 + $0x138] sm:$0xff] }
 0x1a1   : > { %1861 = vmatpush.bf16.msra.mxu3 %v4093_v55 }
 0x1a2   : > { %1655 = vmatpush.bf16.msra.mxu1 %v4074_v35  ;;  %2099 = vmatpush.bf16.msrb.mxu2 %v4111_v37  ;;  %v4106_v35 = vld [vmem:[#allocation10 + $0xc0] sm:$0xff]  ;;  %v4117_v37 = vld [vmem:[#allocation10 + $0x118] sm:$0xff] }
 0x1a3   : > { %2275 = vmatpush.bf16.msra.mxu0 %v4128_v30 }
 0x1a5   : > { %3462 = vmatmul.msk.bf16.vlgmr.msrb.gmra.mxu1 %vm1177_vm9, %v1448_v5  ;;  %1862 = vmatpush.bf16.msra.mxu3 %v4092_v57  ;;  %v4126_v5 = vld [vmem:[#allocation10 + $0x160] sm:$0xff] }
 0x1a6   : > { %2002 = vmatpush.bf16.msrb.mxu1 %v4105_v0  ;;  %2100 = vmatpush.bf16.msrb.mxu2 %v4110_v20  ;;  %v4119_v0 = vld [vmem:[#allocation10 + $0x128] sm:$0xff]  ;;  %v4122_v20 = vld [vmem:[#allocation10 + $0x140] sm:$0xff] }
 0x1a7   : > { %2276 = vmatpush.bf16.msra.mxu0 %v4127_v33 }
 0x1a9   : > { %3530 = vmatmul.msk.bf16.vlgmr.msra.gmra.mxu2 %vm1177_vm9, %v1682_v8  ;;  %1863 = vmatpush.bf16.msra.mxu3 %v4091_v51  ;;  %v4114_v51 = vld [vmem:[#allocation10 + $0x100] sm:$0xff] }
 0x1aa   : > { %2003 = vmatpush.bf16.msrb.mxu1 %v4104_v4  ;;  %2101 = vmatpush.bf16.msrb.mxu2 %v4109_v27  ;;  %v4143_v4 = vld [vmem:[#allocation10 + $0x1e8] sm:$0xff] }
 0x1ab   : > { %2277 = vmatpush.bf16.msra.mxu0 %v4126_v5 }
 0x1ad   : > { %1864 = vmatpush.bf16.msra.mxu3 %v4090_v54 }
 0x1ae   : > { %2004 = vmatpush.bf16.msrb.mxu1 %v4103_v45  ;;  %2102 = vmatpush.bf16.msrb.mxu2 %v4108_v31  ;;  %v4308_v45 = vld [vmem:[%s5045_s6] ss:$0 sm:$0xff]  ;;  %v4139_v31 = vld [vmem:[#allocation10 + $0x1c8] sm:$0xff] }
 0x1af   : > { %2278 = vmatpush.bf16.msra.mxu0 %v4125_v63 }
 0x1b1   : > { %2182 = vmatpush.bf16.msrb.mxu3 %v4121_v34 }
 0x1b2   : > { %2005 = vmatpush.bf16.msrb.mxu1 %v4102_v12  ;;  %2103 = vmatpush.bf16.msrb.mxu2 %v4107_v28 }
 0x1b3   : > { %2279 = vmatpush.bf16.msra.mxu0 %v4124_v6 }
 0x1b5   : > { %3513 = vmatmul.msk.bf16.vlgmr.msra.gmra.mxu1 %vm1177_vm9, %v1620_v60  ;;  %v4144_v60 = vld [vmem:[#allocation10 + $0x1f0] sm:$0xff]  ;;  %2183 = vmatpush.bf16.msrb.mxu3 %v4120_v59  ;;  %vm4981_vm9 = vmand %vm1758_vm1, %vm1256_vm4 }
 0x1b6   : > { %2006 = vmatpush.bf16.msrb.mxu1 %v4101_v16  ;;  %2104 = vmatpush.bf16.msrb.mxu2 %v4106_v35 }
 0x1b7   : > { %2280 = vmatpush.bf16.msra.mxu0 %v4123_v38 }
 0x1b9   : > { %2184 = vmatpush.bf16.msrb.mxu3 %v4119_v0 }
 0x1ba   : > { %2007 = vmatpush.bf16.msrb.mxu1 %v4100_v25  ;;  %2451 = vmatpush.bf16.msra.mxu2 %v4145_v1  ;;  %v1755_v25 = vld [vmem:[#allocation4] sm:$0xe] }
 0x1bb   : > { %2281 = vmatpush.bf16.msra.mxu0 %v4122_v20 }
 0x1bd   : > { %2185 = vmatpush.bf16.msrb.mxu3 %v4118_v48 }
 0x1be   : > { %2008 = vmatpush.bf16.msrb.mxu1 %v4099_v23  ;;  %2452 = vmatpush.bf16.msra.mxu2 %v4144_v60  ;;  %v4130_v23 = vld [vmem:[#allocation10 + $0x180] sm:$0xff] }
 0x1c1   : > { %2186 = vmatpush.bf16.msrb.mxu3 %v4117_v37 }
 0x1c2   : > { %2009 = vmatpush.bf16.msrb.mxu1 %v4098_v18  ;;  %2453 = vmatpush.bf16.msra.mxu2 %v4143_v4  ;;  %v4138_v18 = vld [vmem:[#allocation10 + $0x1c0] sm:$0xff] }
 0x1c6   : > { %2359 = vmatpush.bf16.msra.mxu1 %v4137_v13  ;;  %2454 = vmatpush.bf16.msra.mxu2 %v4142_v11 }
 0x1ca   : > { %2360 = vmatpush.bf16.msra.mxu1 %v4136_v62  ;;  %2455 = vmatpush.bf16.msra.mxu2 %v4141_v15 }
 0x1ce   : > { %2361 = vmatpush.bf16.msra.mxu1 %v4135_v39  ;;  %2456 = vmatpush.bf16.msra.mxu2 %v4140_v24 }
 0x1d2   : > { %2362 = vmatpush.bf16.msra.mxu1 %v4134_v46  ;;  %2457 = vmatpush.bf16.msra.mxu2 %v4139_v31  ;;  %v4177_v31 = vld [vmem:[#allocation12 + $0xf8] sm:$0xff] }
 0x1d6   : > { %2458 = vmatpush.bf16.msra.mxu2 %v4138_v18 }
 0x20c   : > { %v1366_v44 = vpop.f32.mrf.mxu2 }
 0x212   : > { %v1326_v7 = vpop.f32.mrf.mxu1 }
 0x213   : > { %v1420_v9 = vpop.f32.mrf.mxu3  ;;  %v1367_v61 = vadd.f32 %v1366_v44, %v1326_v7  ;;  %v4307_v44 = vld [vmem:[%s5044_s5] ss:$0 sm:$0xff] }
 0x214   : > { %v1368_v3 = vpop.f32.mrf.mxu2 }
 0x215   : > { %v1424_v53 = vadd.f32 %v1420_v9, %v1367_v61  ;;  %v4133_v9 = vld [vmem:[#allocation10 + $0x198] sm:$0xff] }
 0x216   : > { %2363 = vmatpush.bf16.msra.mxu1 %v4133_v9 }
 0x21a   : > { %v1328_v14 = vpop.f32.mrf.mxu1 }
 0x21b   : > { %v1422_v22 = vpop.f32.mrf.mxu3  ;;  %v4132_v14 = vld [vmem:[#allocation10 + $0x190] sm:$0xff] }
 0x21c   : > { %v1540_v42 = vpop.f32.mrf.mxu2  ;;  %v4116_v22 = vld [vmem:[#allocation10 + $0x110] sm:$0xff]  ;;  %2364 = vmatpush.bf16.msra.mxu1 %v4132_v14 }
 0x21d   : > { %2187 = vmatpush.bf16.msrb.mxu3 %v4116_v22 }
 0x220   : > { %2365 = vmatpush.bf16.msra.mxu1 %v4131_v10 }
 0x222   : > { %v1485_v19 = vpop.f32.mrf.mxu1 }
 0x223   : > { %v1602_v29 = vpop.f32.mrf.mxu3  ;;  %v1489_v2 = vadd.f32 %v1485_v19, %v1424_v53  ;;  %v4115_v19 = vld [vmem:[#allocation10 + $0x108] sm:$0xff] }
 0x224   : > { %v1542_v32 = vpop.f32.mrf.mxu2  ;;  %2188 = vmatpush.bf16.msrb.mxu3 %v4115_v19  ;;  %2366 = vmatpush.bf16.msra.mxu1 %v4130_v23  ;;  %v4161_v19 = vld [vmem:[#allocation12 + $0x78] sm:$0xff]  ;;  %v4168_v23 = vld [vmem:[#allocation12 + $0xb0] sm:$0xff] }
 0x225   : > { %v1544_v26 = vadd.f32 %v1540_v42, %v1489_v2 }
 0x227   : > { %v1606_v40 = vadd.f32 %v1602_v29, %v1544_v26 }
 0x228   : > { %2189 = vmatpush.bf16.msrb.mxu3 %v4114_v51  ;;  %v4176_v51 = vld [vmem:[#allocation12 + $0xf0] sm:$0xff] }
 0x22a   : > { %v1487_v56 = vpop.f32.mrf.mxu1 }
 0x22b   : > { %v1604_v58 = vpop.f32.mrf.mxu3 }
 0x22c   : > { %v1719_v8 = vpop.f32.mrf.mxu2 }
 0x232   : > { %v1657_v52 = vpop.f32.mrf.mxu1 }
 0x233   : > { %v1661_v36 = vadd.f32 %v1657_v52, %v1606_v40 }
 0x234   : > { %v1721_v7 = vpop.f32.mrf.mxu2 }
 0x235   : > { %v1723_v43 = vadd.f32 %v1719_v8, %v1661_v36 }
 0x237   : > { %v1728_v3 = vmul.f32 %v4307_v44, %v1723_v43 }
 0x239   : > { %v1733_v12 = vadd.f32 %v4308_v45, %v1728_v3 }
 0x23a   : > { %v1659_v41 = vpop.f32.mrf.mxu1 }
 0x23b   : > { %v1734_v16 = vmax.f32 %v1733_v12, 0.0 }
 0x23d   : > { %v1741_v17 = vpack.c.bf16 %v1734_v16, %v1734_v16 }
 0x23f   : > { %v1743_v42 = vshrl.u32 %v1741_v17, 16  ;;  %v1746_v55 = vshll.u32 %v1741_v17, 16 }
 0x241   : > { %v1745_v27 = vrot.slane %v1743_v42, 6  ;;  %v1748_v47 = vrot.slane %v1746_v55, 7  ;;  %v1142_v42 = vpop.f32.mrf.mxu0 }
 0x243   : > { %v1749_v61 = vor.u32 %v1748_v47, %v1745_v27  ;;  %v1750_v29 = vrot.slane %v1745_v27, 4  ;;  %v4152_v27 = vld [vmem:[#allocation12 + $0x30] sm:$0xff]  ;;  %v4169_v47 = vld [vmem:[#allocation12 + $0xb8] sm:$0xff] }
 0x245   : > { %v1756_v30 = vsel %vm4976_vm8, %v1749_v61, %v1755_v25  ;;  %v1761_v32 = vsel %vm4981_vm9, %v1750_v29, %v1760_v50  ;;  %v4153_v25 = vld [vmem:[#allocation12 + $0x38] sm:$0xff]  ;;  %v4151_v50 = vld [vmem:[#allocation12 + $0x28] sm:$0xff]  ;;  %v4150_v29 = vld [vmem:[#allocation12 + $0x20] sm:$0xff] }
 0x246   : > { %1757 = vst [vmem:[#allocation4] sm:$0xe] %v1756_v30  ;;  %v4160_v30 = vld [vmem:[#allocation12 + $0x70] sm:$0xff] }
 0x247   : > { %1762 = vst [vmem:[#allocation4 + $0x4] sm:$0x1] %v1761_v32  ;;  %v4167_v32 = vld [vmem:[#allocation12 + $0xa8] sm:$0xff] }
 0x249   : > { %v1143_v55 = vpop.f32.mrf.mxu0 }
 0x24a   : > { %v4199_v55 = vld [vmem:[#allocation12 + $0x1a8] sm:$0xff] }
 0x24d   : > { %v1763_v53 = vld [vmem:[#allocation4] sm:$0x7]  ;;  %v2288_v52 = vld [vmem:[#allocation4] sm:$0x8] }
 0x24e   : > { %v1931_v28 = vld [vmem:[#allocation4] sm:$0xe]  ;;  %1926 = vmatmul.bf16.vlgmr.msrb.gmra.mxu0 %v1763_v53  ;;  %v2017_v35 = vld [vmem:[#allocation4 + $0x4] sm:$0x1]  ;;  %v2307_v9 = vunpack.c.l.b16 %v2288_v52  ;;  %v4149_v53 = vld [vmem:[#allocation12 + $0x18] sm:$0xff] }
 0x24f   : > { %v1780_v13 = vld [vmem:[#allocation4] sm:$0xf]  ;;  %v1950_v33 = vunpack.c.l.b16 %v1931_v28  ;;  %v2038_v62 = vunpack.c.l.b16 %v2017_v35  ;;  %v2196_v58 = vld [vmem:[#allocation4 + $0x4] sm:$0x3]  ;;  %2653 = vmatpush.bf16.msrb.mxu0 %v4153_v25  ;;  %v2477_v35 = vld [vmem:[#allocation5 + $0x4] sm:$0x7] }
 0x250   : > { %v1799_v54 = vunpack.c.l.b16 %v1780_v13  ;;  %v2016_v2 = vld [vmem:[#allocation4] sm:$0xe]  ;;  %v2215_v59 = vunpack.c.l.b16 %v2196_v58  ;;  %v2373_v6 = vld [vmem:[#allocation4 + $0x4] sm:$0x7]  ;;  %v4174_v58 = vld [vmem:[#allocation12 + $0xe0] sm:$0xff] }
 0x251   : > { %v2111_v34 = vld [vmem:[#allocation4] sm:$0xc]  ;;  %v2037_v56 = vunpack.c.l.b16 %v2016_v2  ;;  %v1951_v5 = vpack.c.b16 %v1950_v33, %v1950_v33  ;;  %v2392_v11 = vunpack.c.l.b16 %v2373_v6  ;;  %v4166_v33 = vld [vmem:[#allocation12 + $0xa0] sm:$0xff]  ;;  %v4148_v2 = vld [vmem:[#allocation12 + $0x10] sm:$0xff] }
 0x252   : > { %v2130_v1 = vunpack.c.l.b16 %v2111_v34  ;;  %v1800_v26 = vpack.c.b16 %v1799_v54, %v1799_v54  ;;  %v2308_v41 = vpack.c.b16 %v2215_v59, %v2307_v9  ;;  %v4159_v13 = vld [vmem:[#allocation12 + $0x68] sm:$0xff]  ;;  %v4158_v34 = vld [vmem:[#allocation12 + $0x60] sm:$0xff]  ;;  %v4208_v25 = vld [vmem:[#allocation12 + $0x1f0] sm:$0xff] }
 0x253   : > { %v2039_v8 = vpack.c.b16 %v2038_v62, %v2037_v56  ;;  %v1952_v39 = vrot.slane %v1951_v5, 1  ;;  %v2393_v12 = vpack.c.b16 %v2392_v11, %v2307_v9  ;;  %2654 = vmatpush.bf16.msrb.mxu0 %v4152_v27  ;;  %v4175_v54 = vld [vmem:[#allocation12 + $0xe8] sm:$0xff]  ;;  %v4165_v56 = vld [vmem:[#allocation12 + $0x98] sm:$0xff] }
 0x254   : > { %v1804_v60 = vshll.u32 %v1800_v26, 16  ;;  %v2216_v63 = vpack.c.b16 %v2215_v59, %v2130_v1  ;;  %v1802_v46 = vshrl.u32 %v1800_v26, 16  ;;  %v2309_v16 = vrot.slane %v2308_v41, 3  ;;  %v4147_v5 = vld [vmem:[#allocation12 + $0x8] sm:$0xff]  ;;  %v4201_v11 = vld [vmem:[#allocation12 + $0x1b8] sm:$0xff] }
 0x255   : > { %v2041_v40 = vshrl.u32 %v2039_v8, 16  ;;  %v2044_v0 = vshll.u32 %v2039_v8, 16  ;;  %2010 = vmatmul.bf16.vlgmr.msrb.gmra.mxu1 %v1952_v39  ;;  %v2395_v14 = vshrl.u32 %v2393_v12, 16  ;;  %v2398_v15 = vshll.u32 %v2393_v12, 16  ;;  %v4157_v39 = vld [vmem:[#allocation12 + $0x58] sm:$0xff]  ;;  %v4163_v52 = vld [vmem:[#allocation12 + $0x88] sm:$0xff] }
 0x256   : > { %v1806_v4 = vrot.slane %v1804_v60, 1  ;;  %v2218_v36 = vshrl.u32 %v2216_v63, 16  ;;  %v2221_v44 = vshll.u32 %v2216_v63, 16  ;;  %v2131_v20 = vpack.c.b16 %v2038_v62, %v2130_v1  ;;  %2737 = vmatpush.bf16.msrb.mxu1 %v4169_v47  ;;  %v4164_v60 = vld [vmem:[#allocation12 + $0x90] sm:$0xff]  ;;  %v4173_v63 = vld [vmem:[#allocation12 + $0xd8] sm:$0xff]  ;;  %v4171_v9 = vld [vmem:[#allocation12 + $0xc8] sm:$0xff] }
 0x257   : > { %v2043_v43 = vrot.slane %v2041_v40, 1  ;;  %v2046_v45 = vrot.slane %v2044_v0, 2  ;;  %v2397_v17 = vrot.slane %v2395_v14, 3  ;;  %v2400_v22 = vrot.slane %v2398_v15, 4  ;;  %2655 = vmatpush.bf16.msrb.mxu0 %v4151_v50  ;;  %v4146_v40 = vld [vmem:[#allocation12] sm:$0xff]  ;;  %v4193_v0 = vld [vmem:[#allocation12 + $0x178] sm:$0xff] }
 0x258   : > { %v1807_v48 = vor.u32 %v1806_v4, %v1802_v46  ;;  %v2220_v3 = vrot.slane %v2218_v36, 2  ;;  %v2223_v38 = vrot.slane %v2221_v44, 3  ;;  %v2132_v10 = vrot.slane %v2131_v20, 2  ;;  %v4172_v4 = vld [vmem:[#allocation12 + $0xd0] sm:$0xff]  ;;  %v4154_v12 = vld [vmem:[#allocation12 + $0x40] sm:$0xff]  ;;  %v4185_v41 = vld [vmem:[#allocation12 + $0x138] sm:$0xff] }
 0x259   : > { %v2047_v7 = vor.u32 %v2046_v45, %v2043_v43  ;;  %v2401_v24 = vor.u32 %v2400_v22, %v2397_v17  ;;  %v2478_v1 = vsel %vm4960_vm7, 0, %v2477_v35  ;;  %v4192_v43 = vld [vmem:[#allocation12 + $0x170] sm:$0xff]  ;;  %v4209_v15 = vld [vmem:[#allocation12 + $0x1f8] sm:$0xff]  ;;  %v4190_v20 = vld [vmem:[#allocation12 + $0x160] sm:$0xff] }
 0x25a   : > { %1865 = vmatmul.bf16.vlgmr.msra.gmra.mxu3 %v1807_v48  ;;  %v2224_v37 = vor.u32 %v2223_v38, %v2220_v3  ;;  %2738 = vmatpush.bf16.msrb.mxu1 %v4168_v23  ;;  %2479 = vst [vmem:[#allocation5 + $0x4] sm:$0x7] %v2478_v1  ;;  %v4155_v48 = vld [vmem:[#allocation12 + $0x48] sm:$0xff]  ;;  %v4200_v14 = vld [vmem:[#allocation12 + $0x1b0] sm:$0xff]  ;;  %v4189_v27 = vld [vmem:[#allocation12 + $0x158] sm:$0xff] }
 0x25b   : > { %2105 = vmatmul.bf16.vlgmr.msrb.gmra.mxu2 %v2047_v7  ;;  %2592 = vmatpush.bf16.msra.mxu3 %v4161_v19  ;;  %v4162_v7 = vld [vmem:[#allocation12 + $0x80] sm:$0xff]  ;;  %v4191_v3 = vld [vmem:[#allocation12 + $0x168] sm:$0xff]  ;;  %v4309_v23 = vld [vmem:[%s5047_s8] ss:$0 sm:$0xff] }
 0x25c   : > { %2832 = vmatpush.bf16.msrb.mxu2 %v4177_v31  ;;  %2656 = vmatpush.bf16.msrb.mxu0 %v4150_v29  ;;  %v4183_v50 = vld [vmem:[#allocation12 + $0x128] sm:$0xff]  ;;  %v4198_v31 = vld [vmem:[#allocation12 + $0x1a0] sm:$0xff]  ;;  %v4188_v29 = vld [vmem:[#allocation12 + $0x150] sm:$0xff] }
 0x25d   : > { %v4181_v35 = vld [vmem:[#allocation12 + $0x118] sm:$0xff]  ;;  %v4186_v1 = vld [vmem:[#allocation12 + $0x140] sm:$0xff] }
 0x25e   : > { %2282 = vmatmul.bf16.vlgmr.msra.gmra.mxu0 %v2224_v37  ;;  %2739 = vmatpush.bf16.msrb.mxu1 %v4167_v32  ;;  %v4170_v37 = vld [vmem:[#allocation12 + $0xc0] sm:$0xff]  ;;  %v4310_v32 = vld [vmem:[%s5048_s9] ss:$0 sm:$0xff] }
 0x25f   : > { %2593 = vmatpush.bf16.msra.mxu3 %v4160_v30 }
 0x260   : > { %2833 = vmatpush.bf16.msrb.mxu2 %v4176_v51  ;;  %2657 = vmatpush.bf16.msrb.mxu0 %v4149_v53 }
 0x262   : > { %2740 = vmatpush.bf16.msrb.mxu1 %v4166_v33  ;;  %v4206_v33 = vld [vmem:[#allocation12 + $0x1e0] sm:$0xff] }
 0x263   : > { %2594 = vmatpush.bf16.msra.mxu3 %v4159_v13  ;;  %v4197_v13 = vld [vmem:[#allocation12 + $0x198] sm:$0xff] }
 0x264   : > { %2834 = vmatpush.bf16.msrb.mxu2 %v4175_v54  ;;  %2658 = vmatpush.bf16.msrb.mxu0 %v4148_v2  ;;  %v4187_v54 = vld [vmem:[#allocation12 + $0x148] sm:$0xff] }
 0x265   : > { %2367 = vmatmul.bf16.vlgmr.msra.gmra.mxu1 %v2309_v16 }
 0x266   : > { %2741 = vmatpush.bf16.msrb.mxu1 %v4165_v56  ;;  %v4196_v56 = vld [vmem:[#allocation12 + $0x190] sm:$0xff] }
 0x267   : > { %2595 = vmatpush.bf16.msra.mxu3 %v4158_v34 }
 0x268   : > { %2835 = vmatpush.bf16.msrb.mxu2 %v4174_v58  ;;  %2659 = vmatpush.bf16.msrb.mxu0 %v4147_v5  ;;  %v4180_v5 = vld [vmem:[#allocation12 + $0x110] sm:$0xff] }
 0x26a   : > { %2190 = vmatmul.bf16.vlgmr.msrb.gmra.mxu3 %v2132_v10  ;;  %2742 = vmatpush.bf16.msrb.mxu1 %v4164_v60  ;;  %v4184_v10 = vld [vmem:[#allocation12 + $0x130] sm:$0xff] }
 0x26b   : > { %2459 = vmatmul.bf16.vlgmr.msra.gmra.mxu2 %v2401_v24  ;;  %2596 = vmatpush.bf16.msra.mxu3 %v4157_v39  ;;  %v4204_v39 = vld [vmem:[#allocation12 + $0x1d0] sm:$0xff] }
 0x26c   : > { %2836 = vmatpush.bf16.msrb.mxu2 %v4173_v63  ;;  %2660 = vmatpush.bf16.msrb.mxu0 %v4146_v40  ;;  %v2492_v40 = vld [vmem:[#allocation5] sm:$0xe] }
 0x26e   : > { %2743 = vmatpush.bf16.msrb.mxu1 %v4163_v52 }
 0x26f   : > { %2597 = vmatpush.bf16.msra.mxu3 %v4156_v21  ;;  %v4179_v21 = vld [vmem:[#allocation12 + $0x108] sm:$0xff] }
 0x270   : > { %3009 = vmatpush.bf16.msra.mxu0 %v4193_v0  ;;  %2837 = vmatpush.bf16.msrb.mxu2 %v4172_v4  ;;  %v2495_v0 = vld [vmem:[#allocation5 + $0x4] sm:$0x1]  ;;  %v4194_v4 = vld [vmem:[#allocation12 + $0x180] sm:$0xff] }
 0x272   : > { %2744 = vmatpush.bf16.msrb.mxu1 %v4162_v7 }
 0x273   : > { %2598 = vmatpush.bf16.msra.mxu3 %v4155_v48 }
 0x274   : > { %3010 = vmatpush.bf16.msra.mxu0 %v4192_v43  ;;  %2838 = vmatpush.bf16.msrb.mxu2 %v4171_v9  ;;  %v4178_v43 = vld [vmem:[#allocation12 + $0x100] sm:$0xff] }
 0x276   : > { %3094 = vmatpush.bf16.msra.mxu1 %v4201_v11 }
 0x277   : > { %2599 = vmatpush.bf16.msra.mxu3 %v4154_v12 }
 0x278   : > { %3011 = vmatpush.bf16.msra.mxu0 %v4191_v3  ;;  %2839 = vmatpush.bf16.msrb.mxu2 %v4170_v37 }
 0x27a   : > { %3095 = vmatpush.bf16.msra.mxu1 %v4200_v14 }
 0x27b   : > { %2917 = vmatpush.bf16.msrb.mxu3 %v4185_v41 }
 0x27c   : > { %3186 = vmatpush.bf16.msra.mxu2 %v4209_v15  ;;  %3012 = vmatpush.bf16.msra.mxu0 %v4190_v20 }
 0x27e   : > { %3096 = vmatpush.bf16.msra.mxu1 %v4199_v55 }
 0x27f   : > { %2918 = vmatpush.bf16.msrb.mxu3 %v4184_v10 }
 0x280   : > { %3187 = vmatpush.bf16.msra.mxu2 %v4208_v25  ;;  %3013 = vmatpush.bf16.msra.mxu0 %v4189_v27 }
 0x282   : > { %3097 = vmatpush.bf16.msra.mxu1 %v4198_v31 }
 0x283   : > { %2919 = vmatpush.bf16.msrb.mxu3 %v4183_v50 }
 0x284   : > { %3014 = vmatpush.bf16.msra.mxu0 %v4188_v29 }
 0x286   : > { %3098 = vmatpush.bf16.msra.mxu1 %v4197_v13 }
 0x288   : > { %3015 = vmatpush.bf16.msra.mxu0 %v4187_v54 }
 0x28a   : > { %3099 = vmatpush.bf16.msra.mxu1 %v4196_v56 }
 0x28c   : > { %3016 = vmatpush.bf16.msra.mxu0 %v4186_v1 }
 0x2cb   : > { %v1927_v61 = vpop.f32.mrf.mxu0 }
 0x2d2   : > { %v2011_v18 = vpop.f32.mrf.mxu1 }
 0x2d3   : > { %v1929_v28 = vpop.f32.mrf.mxu0 }
 0x2da   : > { %v2013_v62 = vpop.f32.mrf.mxu1 }
 0x2db   : > { %v2283_v59 = vpop.f32.mrf.mxu0  ;;  %v4205_v62 = vld [vmem:[#allocation12 + $0x1d8] sm:$0xff] }
 0x2dd   : > { %v1866_v26 = vpop.f32.mrf.mxu3 }
 0x2de   : > { %v2106_v8 = vpop.f32.mrf.mxu2  ;;  %v1928_v36 = vadd.f32 %v1927_v61, %v1866_v26  ;;  %v4207_v61 = vld [vmem:[#allocation12 + $0x1e8] sm:$0xff] }
 0x2df   : > { %3188 = vmatpush.bf16.msra.mxu2 %v4207_v61 }
 0x2e0   : > { %v2015_v38 = vadd.f32 %v2011_v18, %v1928_v36  ;;  %v4182_v18 = vld [vmem:[#allocation12 + $0x120] sm:$0xff]  ;;  %v4203_v36 = vld [vmem:[#allocation12 + $0x1c8] sm:$0xff] }
 0x2e1   : > { %2920 = vmatpush.bf16.msrb.mxu3 %v4182_v18 }
 0x2e2   : > { %v2368_v46 = vpop.f32.mrf.mxu1  ;;  %v2110_v17 = vadd.f32 %v2106_v8, %v2015_v38  ;;  %v4195_v8 = vld [vmem:[#allocation12 + $0x188] sm:$0xff] }
 0x2e3   : > { %v2285_v6 = vpop.f32.mrf.mxu0  ;;  %3189 = vmatpush.bf16.msra.mxu2 %v4206_v33  ;;  %3100 = vmatpush.bf16.msra.mxu1 %v4195_v8 }
 0x2e5   : > { %v1868_v44 = vpop.f32.mrf.mxu3  ;;  %2921 = vmatpush.bf16.msrb.mxu3 %v4181_v35 }
 0x2e6   : > { %v2108_v45 = vpop.f32.mrf.mxu2 }
 0x2e7   : > { %3190 = vmatpush.bf16.msra.mxu2 %v4205_v62  ;;  %3101 = vmatpush.bf16.msra.mxu1 %v4194_v4  ;;  %v4202_v45 = vld [vmem:[#allocation12 + $0x1c0] sm:$0xff] }
 0x2e9   : > { %2922 = vmatpush.bf16.msrb.mxu3 %v4180_v5 }
 0x2ea   : > { %v2370_v16 = vpop.f32.mrf.mxu1 }
 0x2eb   : > { %3191 = vmatpush.bf16.msra.mxu2 %v4204_v39 }
 0x2ed   : > { %v2191_v22 = vpop.f32.mrf.mxu3  ;;  %2923 = vmatpush.bf16.msrb.mxu3 %v4179_v21 }
 0x2ee   : > { %v2195_v24 = vadd.f32 %v2191_v22, %v2110_v17  ;;  %v2460_v42 = vpop.f32.mrf.mxu2 }
 0x2ef   : > { %3192 = vmatpush.bf16.msra.mxu2 %v4203_v36 }
 0x2f0   : > { %v2287_v47 = vadd.f32 %v2283_v59, %v2195_v24 }
 0x2f1   : > { %2924 = vmatpush.bf16.msrb.mxu3 %v4178_v43 }
 0x2f2   : > { %v2372_v19 = vadd.f32 %v2368_v46, %v2287_v47 }
 0x2f3   : > { %3193 = vmatpush.bf16.msra.mxu2 %v4202_v45 }
 0x2f4   : > { %v2464_v30 = vadd.f32 %v2460_v42, %v2372_v19 }
 0x2f5   : > { %v2193_v51 = vpop.f32.mrf.mxu3 }
 0x2f6   : > { %v2469_v53 = vmul.f32 %v4309_v23, %v2464_v30  ;;  %v2462_v28 = vpop.f32.mrf.mxu2 }
 0x2f8   : > { %v2474_v2 = vadd.f32 %v4310_v32, %v2469_v53 }
 0x2fa   : > { %v2475_v34 = vmax.f32 %v2474_v2, 0.0 }
 0x2fc   : > { %v2480_v58 = vpack.c.bf16 %v2475_v34, %v2475_v34 }
 0x2fe   : > { %v2482_v26 = vshrl.u32 %v2480_v58, 16  ;;  %v2485_v59 = vshll.u32 %v2480_v58, 16 }
 0x300   : > { %v2484_v60 = vrot.slane %v2482_v26, 6  ;;  %v2487_v63 = vrot.slane %v2485_v59, 7 }
 0x302   : > { %v2488_v52 = vor.u32 %v2487_v63, %v2484_v60  ;;  %v2489_v46 = vrot.slane %v2484_v60, 4 }
 0x304   : > { %v2493_v44 = vsel %vm4976_vm8, %v2488_v52, %v2492_v40  ;;  %v2496_v6 = vsel %vm4981_vm9, %v2489_v46, %v2495_v0 }
 0x305   : > { %2494 = vst [vmem:[#allocation5] sm:$0xe] %v2493_v44 }
 0x306   : > { %2497 = vst [vmem:[#allocation5 + $0x4] sm:$0x1] %v2496_v6 }
 0x30c   : > { %v2498_v48 = vld [vmem:[#allocation5] sm:$0x7]  ;;  %v3023_v25 = vld [vmem:[#allocation5] sm:$0x8] }
 0x30d   : > { %v2666_v7 = vld [vmem:[#allocation5] sm:$0xe]  ;;  %2661 = vmatmul.bf16.vlgmr.msrb.gmra.mxu0 %v2498_v48  ;;  %v2752_v38 = vld [vmem:[#allocation5 + $0x4] sm:$0x1]  ;;  %v3042_v32 = vunpack.c.l.b16 %v3023_v25 }
 0x30e   : > { %v2515_v9 = vld [vmem:[#allocation5] sm:$0xf]  ;;  %v2685_v11 = vunpack.c.l.b16 %v2666_v7  ;;  %v2773_v37 = vunpack.c.l.b16 %v2752_v38  ;;  %v2931_v14 = vld [vmem:[#allocation5 + $0x4] sm:$0x3] }
 0x30f   : > { %v2534_v3 = vunpack.c.l.b16 %v2515_v9  ;;  %v2751_v49 = vld [vmem:[#allocation5] sm:$0xe]  ;;  %v2950_v20 = vunpack.c.l.b16 %v2931_v14  ;;  %v3108_v23 = vld [vmem:[#allocation5 + $0x4] sm:$0x7]  ;;  %v4311_v9 = vld [vmem:[%s5050_s11] ss:$0 sm:$0xff] }
 0x310   : > { %v2846_v12 = vld [vmem:[#allocation5] sm:$0xc]  ;;  %v2772_v57 = vunpack.c.l.b16 %v2751_v49  ;;  %v2686_v15 = vpack.c.b16 %v2685_v11, %v2685_v11  ;;  %v3127_v51 = vunpack.c.l.b16 %v3108_v23 }
 0x311   : > { %v2865_v41 = vunpack.c.l.b16 %v2846_v12  ;;  %v2535_v16 = vpack.c.b16 %v2534_v3, %v2534_v3  ;;  %v3043_v33 = vpack.c.b16 %v2950_v20, %v3042_v32  ;;  %v4312_v3 = vld [vmem:[%s5051_s12] ss:$0 sm:$0xff] }
 0x312   : > { %v2774_v17 = vpack.c.b16 %v2773_v37, %v2772_v57  ;;  %v2687_v22 = vrot.slane %v2686_v15, 1  ;;  %v3128_v28 = vpack.c.b16 %v3127_v51, %v3042_v32 }
 0x313   : > { %v2539_v10 = vshll.u32 %v2535_v16, 16  ;;  %v2951_v24 = vpack.c.b16 %v2950_v20, %v2865_v41  ;;  %v2537_v27 = vshrl.u32 %v2535_v16, 16  ;;  %v3044_v35 = vrot.slane %v3043_v33, 3 }
 0x314   : > { %v2776_v42 = vshrl.u32 %v2774_v17, 16  ;;  %v2779_v55 = vshll.u32 %v2774_v17, 16  ;;  %2745 = vmatmul.bf16.vlgmr.msrb.gmra.mxu1 %v2687_v22  ;;  %v3130_v54 = vshrl.u32 %v3128_v28, 16  ;;  %v3133_v2 = vshll.u32 %v3128_v28, 16 }
 0x315   : > { %v2541_v47 = vrot.slane %v2539_v10, 1  ;;  %v2953_v50 = vshrl.u32 %v2951_v24, 16  ;;  %v2956_v19 = vshll.u32 %v2951_v24, 16  ;;  %v2866_v34 = vpack.c.b16 %v2773_v37, %v2865_v41 }
 0x316   : > { %v2778_v31 = vrot.slane %v2776_v42, 1  ;;  %v2781_v61 = vrot.slane %v2779_v55, 2  ;;  %v3132_v56 = vrot.slane %v3130_v54, 3  ;;  %v3135_v62 = vrot.slane %v3133_v2, 4 }
 0x317   : > { %v2542_v29 = vor.u32 %v2541_v47, %v2537_v27  ;;  %v2955_v18 = vrot.slane %v2953_v50, 2  ;;  %v2958_v53 = vrot.slane %v2956_v19, 3  ;;  %v2867_v1 = vrot.slane %v2866_v34, 2 }
 0x318   : > { %v2782_v30 = vor.u32 %v2781_v61, %v2778_v31  ;;  %v3136_v58 = vor.u32 %v3135_v62, %v3132_v56 }
 0x319   : > { %2600 = vmatmul.bf16.vlgmr.msra.gmra.mxu3 %v2542_v29  ;;  %v2959_v13 = vor.u32 %v2958_v53, %v2955_v18 }
 0x31a   : > { %2840 = vmatmul.bf16.vlgmr.msrb.gmra.mxu2 %v2782_v30 }
 0x31d   : > { %3017 = vmatmul.bf16.vlgmr.msra.gmra.mxu0 %v2959_v13 }
 0x324   : > { %3102 = vmatmul.bf16.vlgmr.msra.gmra.mxu1 %v3044_v35 }
 0x329   : > { %2925 = vmatmul.bf16.vlgmr.msrb.gmra.mxu3 %v2867_v1 }
 0x32a   : > { %3194 = vmatmul.bf16.vlgmr.msra.gmra.mxu2 %v3136_v58 }
 0x38a   : > { %v2662_v5 = vpop.f32.mrf.mxu0 }
 0x391   : > { %v2746_v26 = vpop.f32.mrf.mxu1 }
 0x392   : > { %v2664_v59 = vpop.f32.mrf.mxu0 }
 0x399   : > { %v2748_v8 = vpop.f32.mrf.mxu1 }
 0x39a   : > { %v3018_v60 = vpop.f32.mrf.mxu0 }
 0x39c   : > { %v2601_v39 = vpop.f32.mrf.mxu3 }
 0x39d   : > { %v2841_v63 = vpop.f32.mrf.mxu2  ;;  %v2663_v0 = vadd.f32 %v2662_v5, %v2601_v39 }
 0x39f   : > { %v2750_v4 = vadd.f32 %v2746_v26, %v2663_v0 }
 0x3a1   : > { %v3103_v40 = vpop.f32.mrf.mxu1  ;;  %v2845_v44 = vadd.f32 %v2841_v63, %v2750_v4 }
 0x3a2   : > { %v3020_v52 = vpop.f32.mrf.mxu0 }
 0x3a4   : > { %v2603_v21 = vpop.f32.mrf.mxu3 }
 0x3a5   : > { %v2843_v46 = vpop.f32.mrf.mxu2 }
 0x3a9   : > { %v3105_v36 = vpop.f32.mrf.mxu1 }
 0x3ac   : > { %v2926_v6 = vpop.f32.mrf.mxu3 }
 0x3ad   : > { %v2930_v43 = vadd.f32 %v2926_v6, %v2845_v44  ;;  %v3195_v45 = vpop.f32.mrf.mxu2 }
 0x3af   : > { %v3022_v48 = vadd.f32 %v3018_v60, %v2930_v43 }
 0x3b1   : > { %v3107_v7 = vadd.f32 %v3103_v40, %v3022_v48 }
 0x3b3   : > { %v3199_v11 = vadd.f32 %v3195_v45, %v3107_v7 }
 0x3b4   : > { %v2928_v49 = vpop.f32.mrf.mxu3 }
 0x3b5   : > { %v3204_v38 = vmul.f32 %v4311_v9, %v3199_v11  ;;  %v3197_v12 = vpop.f32.mrf.mxu2 }
 0x3b7   : > { %v3209_v57 = vadd.f32 %v4312_v3, %v3204_v38 }
 0x3b9   : > { %v3210_v37 = vmax.f32 %v3209_v57, 0.0 }
 0x3bb   : > { %3212 = vst [vmem:[#allocation6 + $0x1] sm:$0x3f] %v3210_v37 }
 0x3c2   : > { %v3213_v41 = vld [vmem:[#allocation6] ss:$4 sm:$0x3]  ;;  %v3215_v14 = vld [vmem:[#allocation6 + $0x1] ss:$4 sm:$0x3] }
 0x3c3   : > { %v3216_v15 = vmax.f32 %v3213_v41, %v3215_v14  ;;  %v3218_v16 = vld [vmem:[#allocation6 + $0x2] ss:$4 sm:$0x3]  ;;  %v3221_v17 = vld [vmem:[#allocation6 + $0x3] ss:$4 sm:$0x3] }
 0x3c5   : > { %v3219_v20 = vmax.f32 %v3216_v15, %v3218_v16 }
 0x3c7   : > { %v3222_v22 = vmax.f32 %v3219_v20, %v3221_v17 }
 0x3c9   : > { %3223 = vst [vmem:[%s483_s7] sm:$0x3] %v3222_v22 }
 0x3ca   : > { %4430 = shalt.err (!%p4427_p8)
}
 0x3cb   : > { %4243 = dma.vmem_to_hbm [thread:$0]  (%p4590_p5), %s3238_s4, 32, %s3240_s25, %s3225_s27  }
 0x3cc PF: > { %s5077_s15 = sld [smem:[#allocation17_spill]]  ;;  %p4265_p9 = scmp.ge.s32.totalorder %s4473_s28, 2 }
 0x3ce   : > { %p4256_p10 = pnand %p4265_p9, %p4594_p6 }
 0x3d0   : > { %p4257_p11 = pneg %p4256_p10 }
 0x3d2   : > { %s3251_s22 = sand.u32 1, %s5077_s15  }
 0x3d3   : > { %s3252_s24 = scalar_lea.sflag [#allocation9], %s3251_s22 }
 0x3d4   : > { %4456 = dma.done.wait (%p4257_p11), %s3252_s24, 32  }
 0x3d5   : > { %4458 = vsyncadd (%p4257_p11), %s3252_s24, 4294967264  ;;  %s5079_s28 = sld [smem:[#allocation19_spill]]  ;;  %s5082_s25 = smov %s4465_s26 }
 0x3d6   : > { %s5080_s30 = sld [smem:[#allocation18_spill]] }
 0x3d7   : > { %s5081_s27 = sld [smem:[#allocation20_spill]] }
 0x3db   : > { %p25_p12 = scmp.ge.s32.totalorder %s5079_s28, 4  }
 0x3dc   : > { %s5083_s26 = smov %s5080_s30 }
 0x3dd   :  { %27 = sbr.rel (!%p25_p12) target bundleno = 8 (0x8), region = 159 }
 0x3e2   :  { %3258 = vsyncpa [#allocation8], 1 }
 0x3e3   :  { %3260 = vsyncpa [#allocation8 + $0x1], 1 }
 0x3e4   :  { %3261 = vsyncpa [#allocation11], 1 }
 0x3e5   :  { %3262 = vsyncpa [#allocation9], 1 }
 0x3e6   :  { %3264 = vsyncpa [#allocation9 + $0x1], 1 }

</bundles_post_ra>
